<compile_context>
chip_gen: v7x
topology: tpu7x:2x2x1
jax: 0.10.0
libtpu: 0.0.40
codegen_flags: <defaults>
</compile_context>

<pallas_src>
import functools
import math

import jax
import jax.numpy as jnp
from jax.experimental import pallas as pl
from jax.experimental.pallas import tpu as pltpu


def _round_up(x, m):
    return (x + m - 1) // m * m


def _log_sigmoid(x):
    # numerically stable log(sigmoid(x)) = min(x, 0) - log(1 + exp(-|x|))
    # (log1p variant is marginally more accurate; plain log(1+e) kept for
    #  guaranteed Mosaic lowering)
    return jnp.minimum(x, 0.0) - jnp.log(1.0 + jnp.exp(-jnp.abs(x)))


def _nsloss_gather_kernel(idx_ref, emb_ref, w_ref, out_ref, gbuf, sem, *,
                          n, tile_n, num_sampled):
    """One grid step = one tile of `tile_n` batch rows.

    idx_ref : SMEM (n_pad*(1+S),) int32   flat [label, negs...] per row
    emb_ref : VMEM (tile_n, E_pad) f32    auto-pipelined batch tile
    w_ref   : HBM  (num_nodes, E_pad) f32 full output-embedding table
    out_ref : VMEM (1, 8, 128) f32        lane-dense per-tile partial loss
    gbuf    : VMEM (1+S, tile_n, E_pad)   gathered weight rows
    sem     : DMA semaphore (1,)
    """
    s1 = num_sampled + 1
    i = pl.program_id(0)
    base = i * tile_n

    # ---- issue gather DMAs: (1+S) weight rows per batch row -----------------
    @pl.loop(0, tile_n)
    def _issue(r):
        row = base + r
        for j in range(s1):  # static unroll, S is small
            node = idx_ref[row * s1 + j]
            pltpu.make_async_copy(w_ref.at[node], gbuf.at[j, r], sem.at[0]).start()

    # ---- wait for every row copy of this tile (same-shaped descriptors) -----
    @pl.loop(0, tile_n)
    def _wait(r):
        for j in range(s1):
            pltpu.make_async_copy(w_ref.at[0], gbuf.at[j, r], sem.at[0]).wait()

    # ---- scores over E only: elementwise mul + lane reduce (all f32) --------
    emb = emb_ref[...]                                           # (tile_n, E_pad)

    pos_score = jnp.sum(gbuf[0] * emb, axis=1, keepdims=True)    # (tile_n, 1)
    loss_rows = _log_sigmoid(pos_score)
    for j in range(1, s1):
        neg_score = jnp.sum(gbuf[j] * emb, axis=1, keepdims=True)
        loss_rows = loss_rows + _log_sigmoid(-neg_score)

    # mask padded batch rows, reduce to this tile's partial loss
    row_ids = jax.lax.broadcasted_iota(jnp.int32, (tile_n, 1), 0) + base
    valid = (row_ids < n).astype(jnp.float32)
    tile_loss = jnp.sum(loss_rows * valid)

    out_ref[...] = jnp.full((1, 8, 128), tile_loss, dtype=jnp.float32)


def prepare_weights(weights):
    """Zero-pad the embedding axis of the NSLoss table to a multiple of 128
    lanes (and cast to f32).  Call ONCE and reuse across steps so the full
    (num_nodes, E) table is not copied through HBM on every loss call."""
    num_nodes, e = weights.shape
    e_pad = _round_up(max(e, 1), 128)
    if e == e_pad and weights.dtype == jnp.float32:
        return weights
    return jnp.zeros((num_nodes, e_pad), jnp.float32).at[:, :e].set(
        weights.astype(jnp.float32))


def nsloss_pallas(emb, weights, label, negs, *, tile_n=128):
    """NSLoss forward.

    emb     : (n, E)  f32 input embeddings
    weights : (num_nodes, E) or already prepare_weights()-padded table
    label   : (n,)    int positive node per row
    negs    : (n, S)  int negative samples per row
    """
    n, e = emb.shape
    num_sampled = negs.shape[1]
    s1 = num_sampled + 1

    # prefer a table pre-padded once via prepare_weights(); pad here as fallback
    if weights.shape[1] % 128 != 0 or weights.dtype != jnp.float32:
        weights = prepare_weights(weights)
    e_pad = weights.shape[1]
    assert e_pad >= e

    tile_n = min(tile_n, _round_up(n, 8))
    tile_n = _round_up(tile_n, 8)
    n_pad = _round_up(n, tile_n)
    num_tiles = n_pad // tile_n

    emb_p = jnp.zeros((n_pad, e_pad), jnp.float32).at[:n, :e].set(
        emb.astype(jnp.float32))
    # pack [label | negs] into one flat 1-D int32 prefetch array (compact SMEM)
    idx = jnp.concatenate(
        [label.reshape(n, 1).astype(jnp.int32), negs.astype(jnp.int32)], axis=1)
    idx_p = jnp.zeros((n_pad, s1), jnp.int32).at[:n, :].set(idx)
    idx_flat = idx_p.reshape(-1)

    kernel = functools.partial(
        _nsloss_gather_kernel, n=n, tile_n=tile_n, num_sampled=num_sampled)

    partials = pl.pallas_call(
        kernel,
        out_shape=jax.ShapeDtypeStruct((num_tiles, 8, 128), jnp.float32),
        grid_spec=pltpu.PrefetchScalarGridSpec(
            num_scalar_prefetch=1,              # idx_flat -> SMEM
            grid=(num_tiles,),
            in_specs=[
                pl.BlockSpec((tile_n, e_pad), lambda i, idx: (i, 0)),  # emb tile
                pl.BlockSpec(memory_space=pl.ANY),                     # weights in HBM
            ],
            out_specs=pl.BlockSpec((1, 8, 128), lambda i, idx: (i, 0, 0)),
            scratch_shapes=[
                pltpu.VMEM((s1, tile_n, e_pad), jnp.float32),  # gathered rows
                pltpu.SemaphoreType.DMA((1,)),
            ],
        ),
        compiler_params=pltpu.CompilerParams(
            dimension_semantics=("parallel",),   # tiles independent -> v7x 2 TCs
            vmem_limit_bytes=32 * 1024 * 1024,
        ),
    )(idx_flat, emb_p, weights)

    return -jnp.sum(partials[:, 0, 0]) / jnp.float32(n)


def make_nsloss_params(key, num_nodes, embedding_size):
    """Deterministic parameter init mirroring NSLoss.__init__ / reset_parameters."""
    weights = jax.random.normal(key, (num_nodes, embedding_size), jnp.float32) \
              * (1.0 / math.sqrt(embedding_size))
    sw = jnp.array(
        [(math.log(k + 2) - math.log(k + 1)) / math.log(num_nodes + 1)
         for k in range(num_nodes)],
        dtype=jnp.float32,
    )
    sample_weight = sw / jnp.linalg.norm(sw)
    return weights, sample_weight


if __name__ == "__main__":
    num_nodes = 64
    num_sampled = 8
    embedding_size = 32
    n = 8  # batch size

    root = jax.random.PRNGKey(0)
    k_w, k_emb, k_lab, k_neg = jax.random.split(root, 4)

    weights, sample_weight = make_nsloss_params(k_w, num_nodes, embedding_size)
    # one-time pad/cast of the table (hoisted out of the per-step path)
    weights_prepared = prepare_weights(weights)

    emb = jax.random.normal(k_emb, (n, embedding_size), jnp.float32)
    label = jax.random.randint(k_lab, (n,), 0, num_nodes, jnp.int32)
    # torch.multinomial(sample_weight, num_sampled*n, replacement=True) equivalent:
    # categorical sampling proportional to sample_weight (RNG stream differs from
    # torch, semantics match).  y_hat is unused by the reference forward (only
    # y_hat.shape[0] == n is read).
    negs = jax.random.categorical(
        k_neg, jnp.log(sample_weight), shape=(n, num_sampled)
    ).astype(jnp.int32)

    # host-side index sanity check (indices drive HBM DMA sources)
    assert 0 <= int(jnp.min(label)) and int(jnp.max(label)) < num_nodes
    assert 0 <= int(jnp.min(negs)) and int(jnp.max(negs)) < num_nodes

    loss = nsloss_pallas(emb, weights_prepared, label, negs)
    jax.block_until_ready(loss)

    # Pure-JAX reference (exact f32 elementwise path, stable log-sigmoid).
    pos_ref = jax.nn.log_sigmoid(jnp.sum(emb * weights[label], axis=1))
    neg_scores = jnp.sum(weights[negs] * emb[:, None, :], axis=2)      # (n, S)
    neg_ref = jnp.sum(jax.nn.log_sigmoid(-neg_scores), axis=1)
    ref = -jnp.sum(pos_ref + neg_ref) / n
    assert jnp.allclose(loss, ref, rtol=1e-3, atol=1e-3), (loss, ref)

    print("KERNEL_OK")
</pallas_src>

<mosaic_0001>
module attributes {stable_mosaic.version = 11 : i64} {
  func.func @_nsloss_gather_kernel(%arg0: i32, %arg1: memref<72xi32, #tpu.memory_space<smem>>, %arg2: memref<8x128xf32, #tpu.memory_space<vmem>>, %arg3: memref<64x128xf32, #tpu.memory_space<any>>, %arg4: memref<1x8x128xf32, #tpu.memory_space<vmem>>, %arg5: memref<9x8x128xf32, #tpu.memory_space<vmem>>, %arg6: memref<1x!tpu.dma_semaphore, #tpu.memory_space<semaphore_mem>>) attributes {dimension_semantics = [#tpu.dimension_semantics<parallel>], iteration_bounds = array<i64: 1>, scalar_prefetch = 1 : i64, scratch_operands = 2 : i64, tpu.core_type = #tpu.core_type<tc>, window_params = [{transform_indices = @transform_0, window_bounds = array<i64: 8, 128>}, {}, {transform_indices = @transform_2, window_bounds = array<i64: 1, 8, 128>}]} {
    %c8_i32 = arith.constant 8 : i32
    %0 = arith.muli %arg0, %c8_i32 : i32
    %c0_i32 = arith.constant 0 : i32
    %c8_i32_0 = arith.constant 8 : i32
    %1 = arith.addi %c0_i32, %c8_i32_0 : i32
    %c1_i32 = arith.constant 1 : i32
    scf.for %arg7 = %c0_i32 to %1 step %c1_i32  : i32 {
      %c1_i32_74 = arith.constant 1 : i32
      %177 = arith.muli %arg7, %c1_i32_74 : i32
      %c0_i32_75 = arith.constant 0 : i32
      %178 = arith.addi %c0_i32_75, %177 : i32
      %179 = arith.addi %0, %178 : i32
      %c9_i32 = arith.constant 9 : i32
      %180 = arith.muli %179, %c9_i32 : i32
      %c0_i32_76 = arith.constant 0 : i32
      %181 = arith.addi %180, %c0_i32_76 : i32
      %182 = arith.index_cast %181 : i32 to index
      %183 = memref.load %arg1[%182] : memref<72xi32, #tpu.memory_space<smem>>
      %c0_i32_77 = arith.constant 0 : i32
      %c0_i32_78 = arith.constant 0 : i32
      %c0_i32_79 = arith.constant 0 : i32
      %184 = tpu.memref_slice %arg3[%183, %c0_i32_79] : memref<64x128xf32, #tpu.memory_space<any>> -> memref<1x128xf32, #tpu.memory_space<any>>
      %185 = tpu.memref_squeeze %184 : memref<1x128xf32, #tpu.memory_space<any>> -> memref<128xf32, #tpu.memory_space<any>>
      %c0_i32_80 = arith.constant 0 : i32
      %186 = tpu.memref_slice %arg5[%c0_i32_77, %178, %c0_i32_80] : memref<9x8x128xf32, #tpu.memory_space<vmem>> -> memref<1x1x128xf32, #tpu.memory_space<vmem>>
      %187 = tpu.memref_squeeze %186 : memref<1x1x128xf32, #tpu.memory_space<vmem>> -> memref<128xf32, #tpu.memory_space<vmem>>
      %188 = tpu.memref_slice %arg6[%c0_i32_78] : memref<1x!tpu.dma_semaphore, #tpu.memory_space<semaphore_mem>> -> memref<1x!tpu.dma_semaphore, #tpu.memory_space<semaphore_mem>>
      %189 = tpu.memref_squeeze %188 : memref<1x!tpu.dma_semaphore, #tpu.memory_space<semaphore_mem>> -> memref<!tpu.dma_semaphore, #tpu.memory_space<semaphore_mem>>
      tpu.enqueue_dma source(%185 : memref<128xf32, #tpu.memory_space<any>>) target(%187 : memref<128xf32, #tpu.memory_space<vmem>>) target_semaphore(%189 : memref<!tpu.dma_semaphore, #tpu.memory_space<semaphore_mem>>)
      %c9_i32_81 = arith.constant 9 : i32
      %190 = arith.muli %179, %c9_i32_81 : i32
      %c1_i32_82 = arith.constant 1 : i32
      %191 = arith.addi %190, %c1_i32_82 : i32
      %192 = arith.index_cast %191 : i32 to index
      %193 = memref.load %arg1[%192] : memref<72xi32, #tpu.memory_space<smem>>
      %c1_i32_83 = arith.constant 1 : i32
      %c0_i32_84 = arith.constant 0 : i32
      %c0_i32_85 = arith.constant 0 : i32
      %194 = tpu.memref_slice %arg3[%193, %c0_i32_85] : memref<64x128xf32, #tpu.memory_space<any>> -> memref<1x128xf32, #tpu.memory_space<any>>
      %195 = tpu.memref_squeeze %194 : memref<1x128xf32, #tpu.memory_space<any>> -> memref<128xf32, #tpu.memory_space<any>>
      %c0_i32_86 = arith.constant 0 : i32
      %196 = tpu.memref_slice %arg5[%c1_i32_83, %178, %c0_i32_86] : memref<9x8x128xf32, #tpu.memory_space<vmem>> -> memref<1x1x128xf32, #tpu.memory_space<vmem>>
      %197 = tpu.memref_squeeze %196 : memref<1x1x128xf32, #tpu.memory_space<vmem>> -> memref<128xf32, #tpu.memory_space<vmem>>
      %198 = tpu.memref_slice %arg6[%c0_i32_84] : memref<1x!tpu.dma_semaphore, #tpu.memory_space<semaphore_mem>> -> memref<1x!tpu.dma_semaphore, #tpu.memory_space<semaphore_mem>>
      %199 = tpu.memref_squeeze %198 : memref<1x!tpu.dma_semaphore, #tpu.memory_space<semaphore_mem>> -> memref<!tpu.dma_semaphore, #tpu.memory_space<semaphore_mem>>
      tpu.enqueue_dma source(%195 : memref<128xf32, #tpu.memory_space<any>>) target(%197 : memref<128xf32, #tpu.memory_space<vmem>>) target_semaphore(%199 : memref<!tpu.dma_semaphore, #tpu.memory_space<semaphore_mem>>)
      %c9_i32_87 = arith.constant 9 : i32
      %200 = arith.muli %179, %c9_i32_87 : i32
      %c2_i32 = arith.constant 2 : i32
      %201 = arith.addi %200, %c2_i32 : i32
      %202 = arith.index_cast %201 : i32 to index
      %203 = memref.load %arg1[%202] : memref<72xi32, #tpu.memory_space<smem>>
      %c2_i32_88 = arith.constant 2 : i32
      %c0_i32_89 = arith.constant 0 : i32
      %c0_i32_90 = arith.constant 0 : i32
      %204 = tpu.memref_slice %arg3[%203, %c0_i32_90] : memref<64x128xf32, #tpu.memory_space<any>> -> memref<1x128xf32, #tpu.memory_space<any>>
      %205 = tpu.memref_squeeze %204 : memref<1x128xf32, #tpu.memory_space<any>> -> memref<128xf32, #tpu.memory_space<any>>
      %c0_i32_91 = arith.constant 0 : i32
      %206 = tpu.memref_slice %arg5[%c2_i32_88, %178, %c0_i32_91] : memref<9x8x128xf32, #tpu.memory_space<vmem>> -> memref<1x1x128xf32, #tpu.memory_space<vmem>>
      %207 = tpu.memref_squeeze %206 : memref<1x1x128xf32, #tpu.memory_space<vmem>> -> memref<128xf32, #tpu.memory_space<vmem>>
      %208 = tpu.memref_slice %arg6[%c0_i32_89] : memref<1x!tpu.dma_semaphore, #tpu.memory_space<semaphore_mem>> -> memref<1x!tpu.dma_semaphore, #tpu.memory_space<semaphore_mem>>
      %209 = tpu.memref_squeeze %208 : memref<1x!tpu.dma_semaphore, #tpu.memory_space<semaphore_mem>> -> memref<!tpu.dma_semaphore, #tpu.memory_space<semaphore_mem>>
      tpu.enqueue_dma source(%205 : memref<128xf32, #tpu.memory_space<any>>) target(%207 : memref<128xf32, #tpu.memory_space<vmem>>) target_semaphore(%209 : memref<!tpu.dma_semaphore, #tpu.memory_space<semaphore_mem>>)
      %c9_i32_92 = arith.constant 9 : i32
      %210 = arith.muli %179, %c9_i32_92 : i32
      %c3_i32 = arith.constant 3 : i32
      %211 = arith.addi %210, %c3_i32 : i32
      %212 = arith.index_cast %211 : i32 to index
      %213 = memref.load %arg1[%212] : memref<72xi32, #tpu.memory_space<smem>>
      %c3_i32_93 = arith.constant 3 : i32
      %c0_i32_94 = arith.constant 0 : i32
      %c0_i32_95 = arith.constant 0 : i32
      %214 = tpu.memref_slice %arg3[%213, %c0_i32_95] : memref<64x128xf32, #tpu.memory_space<any>> -> memref<1x128xf32, #tpu.memory_space<any>>
      %215 = tpu.memref_squeeze %214 : memref<1x128xf32, #tpu.memory_space<any>> -> memref<128xf32, #tpu.memory_space<any>>
      %c0_i32_96 = arith.constant 0 : i32
      %216 = tpu.memref_slice %arg5[%c3_i32_93, %178, %c0_i32_96] : memref<9x8x128xf32, #tpu.memory_space<vmem>> -> memref<1x1x128xf32, #tpu.memory_space<vmem>>
      %217 = tpu.memref_squeeze %216 : memref<1x1x128xf32, #tpu.memory_space<vmem>> -> memref<128xf32, #tpu.memory_space<vmem>>
      %218 = tpu.memref_slice %arg6[%c0_i32_94] : memref<1x!tpu.dma_semaphore, #tpu.memory_space<semaphore_mem>> -> memref<1x!tpu.dma_semaphore, #tpu.memory_space<semaphore_mem>>
      %219 = tpu.memref_squeeze %218 : memref<1x!tpu.dma_semaphore, #tpu.memory_space<semaphore_mem>> -> memref<!tpu.dma_semaphore, #tpu.memory_space<semaphore_mem>>
      tpu.enqueue_dma source(%215 : memref<128xf32, #tpu.memory_space<any>>) target(%217 : memref<128xf32, #tpu.memory_space<vmem>>) target_semaphore(%219 : memref<!tpu.dma_semaphore, #tpu.memory_space<semaphore_mem>>)
      %c9_i32_97 = arith.constant 9 : i32
      %220 = arith.muli %179, %c9_i32_97 : i32
      %c4_i32 = arith.constant 4 : i32
      %221 = arith.addi %220, %c4_i32 : i32
      %222 = arith.index_cast %221 : i32 to index
      %223 = memref.load %arg1[%222] : memref<72xi32, #tpu.memory_space<smem>>
      %c4_i32_98 = arith.constant 4 : i32
      %c0_i32_99 = arith.constant 0 : i32
      %c0_i32_100 = arith.constant 0 : i32
      %224 = tpu.memref_slice %arg3[%223, %c0_i32_100] : memref<64x128xf32, #tpu.memory_space<any>> -> memref<1x128xf32, #tpu.memory_space<any>>
      %225 = tpu.memref_squeeze %224 : memref<1x128xf32, #tpu.memory_space<any>> -> memref<128xf32, #tpu.memory_space<any>>
      %c0_i32_101 = arith.constant 0 : i32
      %226 = tpu.memref_slice %arg5[%c4_i32_98, %178, %c0_i32_101] : memref<9x8x128xf32, #tpu.memory_space<vmem>> -> memref<1x1x128xf32, #tpu.memory_space<vmem>>
      %227 = tpu.memref_squeeze %226 : memref<1x1x128xf32, #tpu.memory_space<vmem>> -> memref<128xf32, #tpu.memory_space<vmem>>
      %228 = tpu.memref_slice %arg6[%c0_i32_99] : memref<1x!tpu.dma_semaphore, #tpu.memory_space<semaphore_mem>> -> memref<1x!tpu.dma_semaphore, #tpu.memory_space<semaphore_mem>>
      %229 = tpu.memref_squeeze %228 : memref<1x!tpu.dma_semaphore, #tpu.memory_space<semaphore_mem>> -> memref<!tpu.dma_semaphore, #tpu.memory_space<semaphore_mem>>
      tpu.enqueue_dma source(%225 : memref<128xf32, #tpu.memory_space<any>>) target(%227 : memref<128xf32, #tpu.memory_space<vmem>>) target_semaphore(%229 : memref<!tpu.dma_semaphore, #tpu.memory_space<semaphore_mem>>)
      %c9_i32_102 = arith.constant 9 : i32
      %230 = arith.muli %179, %c9_i32_102 : i32
      %c5_i32 = arith.constant 5 : i32
      %231 = arith.addi %230, %c5_i32 : i32
      %232 = arith.index_cast %231 : i32 to index
      %233 = memref.load %arg1[%232] : memref<72xi32, #tpu.memory_space<smem>>
      %c5_i32_103 = arith.constant 5 : i32
      %c0_i32_104 = arith.constant 0 : i32
      %c0_i32_105 = arith.constant 0 : i32
      %234 = tpu.memref_slice %arg3[%233, %c0_i32_105] : memref<64x128xf32, #tpu.memory_space<any>> -> memref<1x128xf32, #tpu.memory_space<any>>
      %235 = tpu.memref_squeeze %234 : memref<1x128xf32, #tpu.memory_space<any>> -> memref<128xf32, #tpu.memory_space<any>>
      %c0_i32_106 = arith.constant 0 : i32
      %236 = tpu.memref_slice %arg5[%c5_i32_103, %178, %c0_i32_106] : memref<9x8x128xf32, #tpu.memory_space<vmem>> -> memref<1x1x128xf32, #tpu.memory_space<vmem>>
      %237 = tpu.memref_squeeze %236 : memref<1x1x128xf32, #tpu.memory_space<vmem>> -> memref<128xf32, #tpu.memory_space<vmem>>
      %238 = tpu.memref_slice %arg6[%c0_i32_104] : memref<1x!tpu.dma_semaphore, #tpu.memory_space<semaphore_mem>> -> memref<1x!tpu.dma_semaphore, #tpu.memory_space<semaphore_mem>>
      %239 = tpu.memref_squeeze %238 : memref<1x!tpu.dma_semaphore, #tpu.memory_space<semaphore_mem>> -> memref<!tpu.dma_semaphore, #tpu.memory_space<semaphore_mem>>
      tpu.enqueue_dma source(%235 : memref<128xf32, #tpu.memory_space<any>>) target(%237 : memref<128xf32, #tpu.memory_space<vmem>>) target_semaphore(%239 : memref<!tpu.dma_semaphore, #tpu.memory_space<semaphore_mem>>)
      %c9_i32_107 = arith.constant 9 : i32
      %240 = arith.muli %179, %c9_i32_107 : i32
      %c6_i32 = arith.constant 6 : i32
      %241 = arith.addi %240, %c6_i32 : i32
      %242 = arith.index_cast %241 : i32 to index
      %243 = memref.load %arg1[%242] : memref<72xi32, #tpu.memory_space<smem>>
      %c6_i32_108 = arith.constant 6 : i32
      %c0_i32_109 = arith.constant 0 : i32
      %c0_i32_110 = arith.constant 0 : i32
      %244 = tpu.memref_slice %arg3[%243, %c0_i32_110] : memref<64x128xf32, #tpu.memory_space<any>> -> memref<1x128xf32, #tpu.memory_space<any>>
      %245 = tpu.memref_squeeze %244 : memref<1x128xf32, #tpu.memory_space<any>> -> memref<128xf32, #tpu.memory_space<any>>
      %c0_i32_111 = arith.constant 0 : i32
      %246 = tpu.memref_slice %arg5[%c6_i32_108, %178, %c0_i32_111] : memref<9x8x128xf32, #tpu.memory_space<vmem>> -> memref<1x1x128xf32, #tpu.memory_space<vmem>>
      %247 = tpu.memref_squeeze %246 : memref<1x1x128xf32, #tpu.memory_space<vmem>> -> memref<128xf32, #tpu.memory_space<vmem>>
      %248 = tpu.memref_slice %arg6[%c0_i32_109] : memref<1x!tpu.dma_semaphore, #tpu.memory_space<semaphore_mem>> -> memref<1x!tpu.dma_semaphore, #tpu.memory_space<semaphore_mem>>
      %249 = tpu.memref_squeeze %248 : memref<1x!tpu.dma_semaphore, #tpu.memory_space<semaphore_mem>> -> memref<!tpu.dma_semaphore, #tpu.memory_space<semaphore_mem>>
      tpu.enqueue_dma source(%245 : memref<128xf32, #tpu.memory_space<any>>) target(%247 : memref<128xf32, #tpu.memory_space<vmem>>) target_semaphore(%249 : memref<!tpu.dma_semaphore, #tpu.memory_space<semaphore_mem>>)
      %c9_i32_112 = arith.constant 9 : i32
      %250 = arith.muli %179, %c9_i32_112 : i32
      %c7_i32 = arith.constant 7 : i32
      %251 = arith.addi %250, %c7_i32 : i32
      %252 = arith.index_cast %251 : i32 to index
      %253 = memref.load %arg1[%252] : memref<72xi32, #tpu.memory_space<smem>>
      %c7_i32_113 = arith.constant 7 : i32
      %c0_i32_114 = arith.constant 0 : i32
      %c0_i32_115 = arith.constant 0 : i32
      %254 = tpu.memref_slice %arg3[%253, %c0_i32_115] : memref<64x128xf32, #tpu.memory_space<any>> -> memref<1x128xf32, #tpu.memory_space<any>>
      %255 = tpu.memref_squeeze %254 : memref<1x128xf32, #tpu.memory_space<any>> -> memref<128xf32, #tpu.memory_space<any>>
      %c0_i32_116 = arith.constant 0 : i32
      %256 = tpu.memref_slice %arg5[%c7_i32_113, %178, %c0_i32_116] : memref<9x8x128xf32, #tpu.memory_space<vmem>> -> memref<1x1x128xf32, #tpu.memory_space<vmem>>
      %257 = tpu.memref_squeeze %256 : memref<1x1x128xf32, #tpu.memory_space<vmem>> -> memref<128xf32, #tpu.memory_space<vmem>>
      %258 = tpu.memref_slice %arg6[%c0_i32_114] : memref<1x!tpu.dma_semaphore, #tpu.memory_space<semaphore_mem>> -> memref<1x!tpu.dma_semaphore, #tpu.memory_space<semaphore_mem>>
      %259 = tpu.memref_squeeze %258 : memref<1x!tpu.dma_semaphore, #tpu.memory_space<semaphore_mem>> -> memref<!tpu.dma_semaphore, #tpu.memory_space<semaphore_mem>>
      tpu.enqueue_dma source(%255 : memref<128xf32, #tpu.memory_space<any>>) target(%257 : memref<128xf32, #tpu.memory_space<vmem>>) target_semaphore(%259 : memref<!tpu.dma_semaphore, #tpu.memory_space<semaphore_mem>>)
      %c9_i32_117 = arith.constant 9 : i32
      %260 = arith.muli %179, %c9_i32_117 : i32
      %c8_i32_118 = arith.constant 8 : i32
      %261 = arith.addi %260, %c8_i32_118 : i32
      %262 = arith.index_cast %261 : i32 to index
      %263 = memref.load %arg1[%262] : memref<72xi32, #tpu.memory_space<smem>>
      %c8_i32_119 = arith.constant 8 : i32
      %c0_i32_120 = arith.constant 0 : i32
      %c0_i32_121 = arith.constant 0 : i32
      %264 = tpu.memref_slice %arg3[%263, %c0_i32_121] : memref<64x128xf32, #tpu.memory_space<any>> -> memref<1x128xf32, #tpu.memory_space<any>>
      %265 = tpu.memref_squeeze %264 : memref<1x128xf32, #tpu.memory_space<any>> -> memref<128xf32, #tpu.memory_space<any>>
      %c0_i32_122 = arith.constant 0 : i32
      %266 = tpu.memref_slice %arg5[%c8_i32_119, %178, %c0_i32_122] : memref<9x8x128xf32, #tpu.memory_space<vmem>> -> memref<1x1x128xf32, #tpu.memory_space<vmem>>
      %267 = tpu.memref_squeeze %266 : memref<1x1x128xf32, #tpu.memory_space<vmem>> -> memref<128xf32, #tpu.memory_space<vmem>>
      %268 = tpu.memref_slice %arg6[%c0_i32_120] : memref<1x!tpu.dma_semaphore, #tpu.memory_space<semaphore_mem>> -> memref<1x!tpu.dma_semaphore, #tpu.memory_space<semaphore_mem>>
      %269 = tpu.memref_squeeze %268 : memref<1x!tpu.dma_semaphore, #tpu.memory_space<semaphore_mem>> -> memref<!tpu.dma_semaphore, #tpu.memory_space<semaphore_mem>>
      tpu.enqueue_dma source(%265 : memref<128xf32, #tpu.memory_space<any>>) target(%267 : memref<128xf32, #tpu.memory_space<vmem>>) target_semaphore(%269 : memref<!tpu.dma_semaphore, #tpu.memory_space<semaphore_mem>>)
    }
    %c8_i32_1 = arith.constant 8 : i32
    %c0_i32_2 = arith.constant 0 : i32
    %c8_i32_3 = arith.constant 8 : i32
    %2 = arith.addi %c0_i32_2, %c8_i32_3 : i32
    %c1_i32_4 = arith.constant 1 : i32
    scf.for %arg7 = %c0_i32_2 to %2 step %c1_i32_4  : i32 {
      %c1_i32_74 = arith.constant 1 : i32
      %177 = arith.muli %arg7, %c1_i32_74 : i32
      %c0_i32_75 = arith.constant 0 : i32
      %178 = arith.addi %c0_i32_75, %177 : i32
      %c0_i32_76 = arith.constant 0 : i32
      %c0_i32_77 = arith.constant 0 : i32
      %c0_i32_78 = arith.constant 0 : i32
      %c0_i32_79 = arith.constant 0 : i32
      %179 = tpu.memref_slice %arg3[%c0_i32_76, %c0_i32_79] : memref<64x128xf32, #tpu.memory_space<any>> -> memref<1x128xf32, #tpu.memory_space<any>>
      %180 = tpu.memref_squeeze %179 : memref<1x128xf32, #tpu.memory_space<any>> -> memref<128xf32, #tpu.memory_space<any>>
      %c0_i32_80 = arith.constant 0 : i32
      %181 = tpu.memref_slice %arg5[%c0_i32_77, %178, %c0_i32_80] : memref<9x8x128xf32, #tpu.memory_space<vmem>> -> memref<1x1x128xf32, #tpu.memory_space<vmem>>
      %182 = tpu.memref_squeeze %181 : memref<1x1x128xf32, #tpu.memory_space<vmem>> -> memref<128xf32, #tpu.memory_space<vmem>>
      %183 = tpu.memref_slice %arg6[%c0_i32_78] : memref<1x!tpu.dma_semaphore, #tpu.memory_space<semaphore_mem>> -> memref<1x!tpu.dma_semaphore, #tpu.memory_space<semaphore_mem>>
      %184 = tpu.memref_squeeze %183 : memref<1x!tpu.dma_semaphore, #tpu.memory_space<semaphore_mem>> -> memref<!tpu.dma_semaphore, #tpu.memory_space<semaphore_mem>>
      tpu.wait_dma2 semaphore(%184 : memref<!tpu.dma_semaphore, #tpu.memory_space<semaphore_mem>>) src(%180 : memref<128xf32, #tpu.memory_space<any>>) dst(%182 : memref<128xf32, #tpu.memory_space<vmem>>)
      %c0_i32_81 = arith.constant 0 : i32
      %c1_i32_82 = arith.constant 1 : i32
      %c0_i32_83 = arith.constant 0 : i32
      %c0_i32_84 = arith.constant 0 : i32
      %185 = tpu.memref_slice %arg3[%c0_i32_81, %c0_i32_84] : memref<64x128xf32, #tpu.memory_space<any>> -> memref<1x128xf32, #tpu.memory_space<any>>
      %186 = tpu.memref_squeeze %185 : memref<1x128xf32, #tpu.memory_space<any>> -> memref<128xf32, #tpu.memory_space<any>>
      %c0_i32_85 = arith.constant 0 : i32
      %187 = tpu.memref_slice %arg5[%c1_i32_82, %178, %c0_i32_85] : memref<9x8x128xf32, #tpu.memory_space<vmem>> -> memref<1x1x128xf32, #tpu.memory_space<vmem>>
      %188 = tpu.memref_squeeze %187 : memref<1x1x128xf32, #tpu.memory_space<vmem>> -> memref<128xf32, #tpu.memory_space<vmem>>
      %189 = tpu.memref_slice %arg6[%c0_i32_83] : memref<1x!tpu.dma_semaphore, #tpu.memory_space<semaphore_mem>> -> memref<1x!tpu.dma_semaphore, #tpu.memory_space<semaphore_mem>>
      %190 = tpu.memref_squeeze %189 : memref<1x!tpu.dma_semaphore, #tpu.memory_space<semaphore_mem>> -> memref<!tpu.dma_semaphore, #tpu.memory_space<semaphore_mem>>
      tpu.wait_dma2 semaphore(%190 : memref<!tpu.dma_semaphore, #tpu.memory_space<semaphore_mem>>) src(%186 : memref<128xf32, #tpu.memory_space<any>>) dst(%188 : memref<128xf32, #tpu.memory_space<vmem>>)
      %c0_i32_86 = arith.constant 0 : i32
      %c2_i32 = arith.constant 2 : i32
      %c0_i32_87 = arith.constant 0 : i32
      %c0_i32_88 = arith.constant 0 : i32
      %191 = tpu.memref_slice %arg3[%c0_i32_86, %c0_i32_88] : memref<64x128xf32, #tpu.memory_space<any>> -> memref<1x128xf32, #tpu.memory_space<any>>
      %192 = tpu.memref_squeeze %191 : memref<1x128xf32, #tpu.memory_space<any>> -> memref<128xf32, #tpu.memory_space<any>>
      %c0_i32_89 = arith.constant 0 : i32
      %193 = tpu.memref_slice %arg5[%c2_i32, %178, %c0_i32_89] : memref<9x8x128xf32, #tpu.memory_space<vmem>> -> memref<1x1x128xf32, #tpu.memory_space<vmem>>
      %194 = tpu.memref_squeeze %193 : memref<1x1x128xf32, #tpu.memory_space<vmem>> -> memref<128xf32, #tpu.memory_space<vmem>>
      %195 = tpu.memref_slice %arg6[%c0_i32_87] : memref<1x!tpu.dma_semaphore, #tpu.memory_space<semaphore_mem>> -> memref<1x!tpu.dma_semaphore, #tpu.memory_space<semaphore_mem>>
      %196 = tpu.memref_squeeze %195 : memref<1x!tpu.dma_semaphore, #tpu.memory_space<semaphore_mem>> -> memref<!tpu.dma_semaphore, #tpu.memory_space<semaphore_mem>>
      tpu.wait_dma2 semaphore(%196 : memref<!tpu.dma_semaphore, #tpu.memory_space<semaphore_mem>>) src(%192 : memref<128xf32, #tpu.memory_space<any>>) dst(%194 : memref<128xf32, #tpu.memory_space<vmem>>)
      %c0_i32_90 = arith.constant 0 : i32
      %c3_i32 = arith.constant 3 : i32
      %c0_i32_91 = arith.constant 0 : i32
      %c0_i32_92 = arith.constant 0 : i32
      %197 = tpu.memref_slice %arg3[%c0_i32_90, %c0_i32_92] : memref<64x128xf32, #tpu.memory_space<any>> -> memref<1x128xf32, #tpu.memory_space<any>>
      %198 = tpu.memref_squeeze %197 : memref<1x128xf32, #tpu.memory_space<any>> -> memref<128xf32, #tpu.memory_space<any>>
      %c0_i32_93 = arith.constant 0 : i32
      %199 = tpu.memref_slice %arg5[%c3_i32, %178, %c0_i32_93] : memref<9x8x128xf32, #tpu.memory_space<vmem>> -> memref<1x1x128xf32, #tpu.memory_space<vmem>>
      %200 = tpu.memref_squeeze %199 : memref<1x1x128xf32, #tpu.memory_space<vmem>> -> memref<128xf32, #tpu.memory_space<vmem>>
      %201 = tpu.memref_slice %arg6[%c0_i32_91] : memref<1x!tpu.dma_semaphore, #tpu.memory_space<semaphore_mem>> -> memref<1x!tpu.dma_semaphore, #tpu.memory_space<semaphore_mem>>
      %202 = tpu.memref_squeeze %201 : memref<1x!tpu.dma_semaphore, #tpu.memory_space<semaphore_mem>> -> memref<!tpu.dma_semaphore, #tpu.memory_space<semaphore_mem>>
      tpu.wait_dma2 semaphore(%202 : memref<!tpu.dma_semaphore, #tpu.memory_space<semaphore_mem>>) src(%198 : memref<128xf32, #tpu.memory_space<any>>) dst(%200 : memref<128xf32, #tpu.memory_space<vmem>>)
      %c0_i32_94 = arith.constant 0 : i32
      %c4_i32 = arith.constant 4 : i32
      %c0_i32_95 = arith.constant 0 : i32
      %c0_i32_96 = arith.constant 0 : i32
      %203 = tpu.memref_slice %arg3[%c0_i32_94, %c0_i32_96] : memref<64x128xf32, #tpu.memory_space<any>> -> memref<1x128xf32, #tpu.memory_space<any>>
      %204 = tpu.memref_squeeze %203 : memref<1x128xf32, #tpu.memory_space<any>> -> memref<128xf32, #tpu.memory_space<any>>
      %c0_i32_97 = arith.constant 0 : i32
      %205 = tpu.memref_slice %arg5[%c4_i32, %178, %c0_i32_97] : memref<9x8x128xf32, #tpu.memory_space<vmem>> -> memref<1x1x128xf32, #tpu.memory_space<vmem>>
      %206 = tpu.memref_squeeze %205 : memref<1x1x128xf32, #tpu.memory_space<vmem>> -> memref<128xf32, #tpu.memory_space<vmem>>
      %207 = tpu.memref_slice %arg6[%c0_i32_95] : memref<1x!tpu.dma_semaphore, #tpu.memory_space<semaphore_mem>> -> memref<1x!tpu.dma_semaphore, #tpu.memory_space<semaphore_mem>>
      %208 = tpu.memref_squeeze %207 : memref<1x!tpu.dma_semaphore, #tpu.memory_space<semaphore_mem>> -> memref<!tpu.dma_semaphore, #tpu.memory_space<semaphore_mem>>
      tpu.wait_dma2 semaphore(%208 : memref<!tpu.dma_semaphore, #tpu.memory_space<semaphore_mem>>) src(%204 : memref<128xf32, #tpu.memory_space<any>>) dst(%206 : memref<128xf32, #tpu.memory_space<vmem>>)
      %c0_i32_98 = arith.constant 0 : i32
      %c5_i32 = arith.constant 5 : i32
      %c0_i32_99 = arith.constant 0 : i32
      %c0_i32_100 = arith.constant 0 : i32
      %209 = tpu.memref_slice %arg3[%c0_i32_98, %c0_i32_100] : memref<64x128xf32, #tpu.memory_space<any>> -> memref<1x128xf32, #tpu.memory_space<any>>
      %210 = tpu.memref_squeeze %209 : memref<1x128xf32, #tpu.memory_space<any>> -> memref<128xf32, #tpu.memory_space<any>>
      %c0_i32_101 = arith.constant 0 : i32
      %211 = tpu.memref_slice %arg5[%c5_i32, %178, %c0_i32_101] : memref<9x8x128xf32, #tpu.memory_space<vmem>> -> memref<1x1x128xf32, #tpu.memory_space<vmem>>
      %212 = tpu.memref_squeeze %211 : memref<1x1x128xf32, #tpu.memory_space<vmem>> -> memref<128xf32, #tpu.memory_space<vmem>>
      %213 = tpu.memref_slice %arg6[%c0_i32_99] : memref<1x!tpu.dma_semaphore, #tpu.memory_space<semaphore_mem>> -> memref<1x!tpu.dma_semaphore, #tpu.memory_space<semaphore_mem>>
      %214 = tpu.memref_squeeze %213 : memref<1x!tpu.dma_semaphore, #tpu.memory_space<semaphore_mem>> -> memref<!tpu.dma_semaphore, #tpu.memory_space<semaphore_mem>>
      tpu.wait_dma2 semaphore(%214 : memref<!tpu.dma_semaphore, #tpu.memory_space<semaphore_mem>>) src(%210 : memref<128xf32, #tpu.memory_space<any>>) dst(%212 : memref<128xf32, #tpu.memory_space<vmem>>)
      %c0_i32_102 = arith.constant 0 : i32
      %c6_i32 = arith.constant 6 : i32
      %c0_i32_103 = arith.constant 0 : i32
      %c0_i32_104 = arith.constant 0 : i32
      %215 = tpu.memref_slice %arg3[%c0_i32_102, %c0_i32_104] : memref<64x128xf32, #tpu.memory_space<any>> -> memref<1x128xf32, #tpu.memory_space<any>>
      %216 = tpu.memref_squeeze %215 : memref<1x128xf32, #tpu.memory_space<any>> -> memref<128xf32, #tpu.memory_space<any>>
      %c0_i32_105 = arith.constant 0 : i32
      %217 = tpu.memref_slice %arg5[%c6_i32, %178, %c0_i32_105] : memref<9x8x128xf32, #tpu.memory_space<vmem>> -> memref<1x1x128xf32, #tpu.memory_space<vmem>>
      %218 = tpu.memref_squeeze %217 : memref<1x1x128xf32, #tpu.memory_space<vmem>> -> memref<128xf32, #tpu.memory_space<vmem>>
      %219 = tpu.memref_slice %arg6[%c0_i32_103] : memref<1x!tpu.dma_semaphore, #tpu.memory_space<semaphore_mem>> -> memref<1x!tpu.dma_semaphore, #tpu.memory_space<semaphore_mem>>
      %220 = tpu.memref_squeeze %219 : memref<1x!tpu.dma_semaphore, #tpu.memory_space<semaphore_mem>> -> memref<!tpu.dma_semaphore, #tpu.memory_space<semaphore_mem>>
      tpu.wait_dma2 semaphore(%220 : memref<!tpu.dma_semaphore, #tpu.memory_space<semaphore_mem>>) src(%216 : memref<128xf32, #tpu.memory_space<any>>) dst(%218 : memref<128xf32, #tpu.memory_space<vmem>>)
      %c0_i32_106 = arith.constant 0 : i32
      %c7_i32 = arith.constant 7 : i32
      %c0_i32_107 = arith.constant 0 : i32
      %c0_i32_108 = arith.constant 0 : i32
      %221 = tpu.memref_slice %arg3[%c0_i32_106, %c0_i32_108] : memref<64x128xf32, #tpu.memory_space<any>> -> memref<1x128xf32, #tpu.memory_space<any>>
      %222 = tpu.memref_squeeze %221 : memref<1x128xf32, #tpu.memory_space<any>> -> memref<128xf32, #tpu.memory_space<any>>
      %c0_i32_109 = arith.constant 0 : i32
      %223 = tpu.memref_slice %arg5[%c7_i32, %178, %c0_i32_109] : memref<9x8x128xf32, #tpu.memory_space<vmem>> -> memref<1x1x128xf32, #tpu.memory_space<vmem>>
      %224 = tpu.memref_squeeze %223 : memref<1x1x128xf32, #tpu.memory_space<vmem>> -> memref<128xf32, #tpu.memory_space<vmem>>
      %225 = tpu.memref_slice %arg6[%c0_i32_107] : memref<1x!tpu.dma_semaphore, #tpu.memory_space<semaphore_mem>> -> memref<1x!tpu.dma_semaphore, #tpu.memory_space<semaphore_mem>>
      %226 = tpu.memref_squeeze %225 : memref<1x!tpu.dma_semaphore, #tpu.memory_space<semaphore_mem>> -> memref<!tpu.dma_semaphore, #tpu.memory_space<semaphore_mem>>
      tpu.wait_dma2 semaphore(%226 : memref<!tpu.dma_semaphore, #tpu.memory_space<semaphore_mem>>) src(%222 : memref<128xf32, #tpu.memory_space<any>>) dst(%224 : memref<128xf32, #tpu.memory_space<vmem>>)
      %c0_i32_110 = arith.constant 0 : i32
      %c8_i32_111 = arith.constant 8 : i32
      %c0_i32_112 = arith.constant 0 : i32
      %c0_i32_113 = arith.constant 0 : i32
      %227 = tpu.memref_slice %arg3[%c0_i32_110, %c0_i32_113] : memref<64x128xf32, #tpu.memory_space<any>> -> memref<1x128xf32, #tpu.memory_space<any>>
      %228 = tpu.memref_squeeze %227 : memref<1x128xf32, #tpu.memory_space<any>> -> memref<128xf32, #tpu.memory_space<any>>
      %c0_i32_114 = arith.constant 0 : i32
      %229 = tpu.memref_slice %arg5[%c8_i32_111, %178, %c0_i32_114] : memref<9x8x128xf32, #tpu.memory_space<vmem>> -> memref<1x1x128xf32, #tpu.memory_space<vmem>>
      %230 = tpu.memref_squeeze %229 : memref<1x1x128xf32, #tpu.memory_space<vmem>> -> memref<128xf32, #tpu.memory_space<vmem>>
      %231 = tpu.memref_slice %arg6[%c0_i32_112] : memref<1x!tpu.dma_semaphore, #tpu.memory_space<semaphore_mem>> -> memref<1x!tpu.dma_semaphore, #tpu.memory_space<semaphore_mem>>
      %232 = tpu.memref_squeeze %231 : memref<1x!tpu.dma_semaphore, #tpu.memory_space<semaphore_mem>> -> memref<!tpu.dma_semaphore, #tpu.memory_space<semaphore_mem>>
      tpu.wait_dma2 semaphore(%232 : memref<!tpu.dma_semaphore, #tpu.memory_space<semaphore_mem>>) src(%228 : memref<128xf32, #tpu.memory_space<any>>) dst(%230 : memref<128xf32, #tpu.memory_space<vmem>>)
    }
    %c8_i32_5 = arith.constant 8 : i32
    %c0 = arith.constant 0 : index
    %c0_6 = arith.constant 0 : index
    %3 = vector.load %arg2[%c0, %c0_6] : memref<8x128xf32, #tpu.memory_space<vmem>>, vector<8x128xf32>
    %c0_7 = arith.constant 0 : index
    %c0_8 = arith.constant 0 : index
    %c0_9 = arith.constant 0 : index
    %4 = vector.load %arg5[%c0_7, %c0_8, %c0_9] : memref<9x8x128xf32, #tpu.memory_space<vmem>>, vector<1x8x128xf32>
    %5 = vector.shape_cast %4 : vector<1x8x128xf32> to vector<8x128xf32>
    %6 = arith.mulf %5, %3 : vector<8x128xf32>
    %cst = arith.constant dense<0.000000e+00> : vector<8xf32>
    %7 = vector.multi_reduction <add>, %6, %cst [1] : vector<8x128xf32> to vector<8xf32>
    %8 = vector.shape_cast %7 : vector<8xf32> to vector<8x1xf32>
    %cst_10 = arith.constant 0.000000e+00 : f32
    %9 = vector.broadcast %cst_10 : f32 to vector<8x1xf32>
    %10 = arith.minimumf %8, %9 : vector<8x1xf32>
    %11 = math.absf %8 : vector<8x1xf32>
    %cst_11 = arith.constant 0.000000e+00 : f32
    %12 = vector.broadcast %cst_11 : f32 to vector<8x1xf32>
    %13 = arith.subf %12, %11 : vector<8x1xf32>
    %14 = math.exp %13 : vector<8x1xf32>
    %cst_12 = arith.constant 1.000000e+00 : f32
    %15 = vector.broadcast %cst_12 : f32 to vector<8x1xf32>
    %16 = arith.addf %15, %14 : vector<8x1xf32>
    %17 = math.log %16 : vector<8x1xf32>
    %18 = arith.subf %10, %17 : vector<8x1xf32>
    %c1 = arith.constant 1 : index
    %c0_13 = arith.constant 0 : index
    %c0_14 = arith.constant 0 : index
    %19 = vector.load %arg5[%c1, %c0_13, %c0_14] : memref<9x8x128xf32, #tpu.memory_space<vmem>>, vector<1x8x128xf32>
    %20 = vector.shape_cast %19 : vector<1x8x128xf32> to vector<8x128xf32>
    %21 = arith.mulf %20, %3 : vector<8x128xf32>
    %cst_15 = arith.constant dense<0.000000e+00> : vector<8xf32>
    %22 = vector.multi_reduction <add>, %21, %cst_15 [1] : vector<8x128xf32> to vector<8xf32>
    %23 = vector.shape_cast %22 : vector<8xf32> to vector<8x1xf32>
    %cst_16 = arith.constant 0.000000e+00 : f32
    %24 = vector.broadcast %cst_16 : f32 to vector<8x1xf32>
    %25 = arith.subf %24, %23 : vector<8x1xf32>
    %cst_17 = arith.constant 0.000000e+00 : f32
    %26 = vector.broadcast %cst_17 : f32 to vector<8x1xf32>
    %27 = arith.minimumf %25, %26 : vector<8x1xf32>
    %28 = math.absf %25 : vector<8x1xf32>
    %cst_18 = arith.constant 0.000000e+00 : f32
    %29 = vector.broadcast %cst_18 : f32 to vector<8x1xf32>
    %30 = arith.subf %29, %28 : vector<8x1xf32>
    %31 = math.exp %30 : vector<8x1xf32>
    %cst_19 = arith.constant 1.000000e+00 : f32
    %32 = vector.broadcast %cst_19 : f32 to vector<8x1xf32>
    %33 = arith.addf %32, %31 : vector<8x1xf32>
    %34 = math.log %33 : vector<8x1xf32>
    %35 = arith.subf %27, %34 : vector<8x1xf32>
    %36 = arith.addf %18, %35 : vector<8x1xf32>
    %c2 = arith.constant 2 : index
    %c0_20 = arith.constant 0 : index
    %c0_21 = arith.constant 0 : index
    %37 = vector.load %arg5[%c2, %c0_20, %c0_21] : memref<9x8x128xf32, #tpu.memory_space<vmem>>, vector<1x8x128xf32>
    %38 = vector.shape_cast %37 : vector<1x8x128xf32> to vector<8x128xf32>
    %39 = arith.mulf %38, %3 : vector<8x128xf32>
    %cst_22 = arith.constant dense<0.000000e+00> : vector<8xf32>
    %40 = vector.multi_reduction <add>, %39, %cst_22 [1] : vector<8x128xf32> to vector<8xf32>
    %41 = vector.shape_cast %40 : vector<8xf32> to vector<8x1xf32>
    %cst_23 = arith.constant 0.000000e+00 : f32
    %42 = vector.broadcast %cst_23 : f32 to vector<8x1xf32>
    %43 = arith.subf %42, %41 : vector<8x1xf32>
    %cst_24 = arith.constant 0.000000e+00 : f32
    %44 = vector.broadcast %cst_24 : f32 to vector<8x1xf32>
    %45 = arith.minimumf %43, %44 : vector<8x1xf32>
    %46 = math.absf %43 : vector<8x1xf32>
    %cst_25 = arith.constant 0.000000e+00 : f32
    %47 = vector.broadcast %cst_25 : f32 to vector<8x1xf32>
    %48 = arith.subf %47, %46 : vector<8x1xf32>
    %49 = math.exp %48 : vector<8x1xf32>
    %cst_26 = arith.constant 1.000000e+00 : f32
    %50 = vector.broadcast %cst_26 : f32 to vector<8x1xf32>
    %51 = arith.addf %50, %49 : vector<8x1xf32>
    %52 = math.log %51 : vector<8x1xf32>
    %53 = arith.subf %45, %52 : vector<8x1xf32>
    %54 = arith.addf %36, %53 : vector<8x1xf32>
    %c3 = arith.constant 3 : index
    %c0_27 = arith.constant 0 : index
    %c0_28 = arith.constant 0 : index
    %55 = vector.load %arg5[%c3, %c0_27, %c0_28] : memref<9x8x128xf32, #tpu.memory_space<vmem>>, vector<1x8x128xf32>
    %56 = vector.shape_cast %55 : vector<1x8x128xf32> to vector<8x128xf32>
    %57 = arith.mulf %56, %3 : vector<8x128xf32>
    %cst_29 = arith.constant dense<0.000000e+00> : vector<8xf32>
    %58 = vector.multi_reduction <add>, %57, %cst_29 [1] : vector<8x128xf32> to vector<8xf32>
    %59 = vector.shape_cast %58 : vector<8xf32> to vector<8x1xf32>
    %cst_30 = arith.constant 0.000000e+00 : f32
    %60 = vector.broadcast %cst_30 : f32 to vector<8x1xf32>
    %61 = arith.subf %60, %59 : vector<8x1xf32>
    %cst_31 = arith.constant 0.000000e+00 : f32
    %62 = vector.broadcast %cst_31 : f32 to vector<8x1xf32>
    %63 = arith.minimumf %61, %62 : vector<8x1xf32>
    %64 = math.absf %61 : vector<8x1xf32>
    %cst_32 = arith.constant 0.000000e+00 : f32
    %65 = vector.broadcast %cst_32 : f32 to vector<8x1xf32>
    %66 = arith.subf %65, %64 : vector<8x1xf32>
    %67 = math.exp %66 : vector<8x1xf32>
    %cst_33 = arith.constant 1.000000e+00 : f32
    %68 = vector.broadcast %cst_33 : f32 to vector<8x1xf32>
    %69 = arith.addf %68, %67 : vector<8x1xf32>
    %70 = math.log %69 : vector<8x1xf32>
    %71 = arith.subf %63, %70 : vector<8x1xf32>
    %72 = arith.addf %54, %71 : vector<8x1xf32>
    %c4 = arith.constant 4 : index
    %c0_34 = arith.constant 0 : index
    %c0_35 = arith.constant 0 : index
    %73 = vector.load %arg5[%c4, %c0_34, %c0_35] : memref<9x8x128xf32, #tpu.memory_space<vmem>>, vector<1x8x128xf32>
    %74 = vector.shape_cast %73 : vector<1x8x128xf32> to vector<8x128xf32>
    %75 = arith.mulf %74, %3 : vector<8x128xf32>
    %cst_36 = arith.constant dense<0.000000e+00> : vector<8xf32>
    %76 = vector.multi_reduction <add>, %75, %cst_36 [1] : vector<8x128xf32> to vector<8xf32>
    %77 = vector.shape_cast %76 : vector<8xf32> to vector<8x1xf32>
    %cst_37 = arith.constant 0.000000e+00 : f32
    %78 = vector.broadcast %cst_37 : f32 to vector<8x1xf32>
    %79 = arith.subf %78, %77 : vector<8x1xf32>
    %cst_38 = arith.constant 0.000000e+00 : f32
    %80 = vector.broadcast %cst_38 : f32 to vector<8x1xf32>
    %81 = arith.minimumf %79, %80 : vector<8x1xf32>
    %82 = math.absf %79 : vector<8x1xf32>
    %cst_39 = arith.constant 0.000000e+00 : f32
    %83 = vector.broadcast %cst_39 : f32 to vector<8x1xf32>
    %84 = arith.subf %83, %82 : vector<8x1xf32>
    %85 = math.exp %84 : vector<8x1xf32>
    %cst_40 = arith.constant 1.000000e+00 : f32
    %86 = vector.broadcast %cst_40 : f32 to vector<8x1xf32>
    %87 = arith.addf %86, %85 : vector<8x1xf32>
    %88 = math.log %87 : vector<8x1xf32>
    %89 = arith.subf %81, %88 : vector<8x1xf32>
    %90 = arith.addf %72, %89 : vector<8x1xf32>
    %c5 = arith.constant 5 : index
    %c0_41 = arith.constant 0 : index
    %c0_42 = arith.constant 0 : index
    %91 = vector.load %arg5[%c5, %c0_41, %c0_42] : memref<9x8x128xf32, #tpu.memory_space<vmem>>, vector<1x8x128xf32>
    %92 = vector.shape_cast %91 : vector<1x8x128xf32> to vector<8x128xf32>
    %93 = arith.mulf %92, %3 : vector<8x128xf32>
    %cst_43 = arith.constant dense<0.000000e+00> : vector<8xf32>
    %94 = vector.multi_reduction <add>, %93, %cst_43 [1] : vector<8x128xf32> to vector<8xf32>
    %95 = vector.shape_cast %94 : vector<8xf32> to vector<8x1xf32>
    %cst_44 = arith.constant 0.000000e+00 : f32
    %96 = vector.broadcast %cst_44 : f32 to vector<8x1xf32>
    %97 = arith.subf %96, %95 : vector<8x1xf32>
    %cst_45 = arith.constant 0.000000e+00 : f32
    %98 = vector.broadcast %cst_45 : f32 to vector<8x1xf32>
    %99 = arith.minimumf %97, %98 : vector<8x1xf32>
    %100 = math.absf %97 : vector<8x1xf32>
    %cst_46 = arith.constant 0.000000e+00 : f32
    %101 = vector.broadcast %cst_46 : f32 to vector<8x1xf32>
    %102 = arith.subf %101, %100 : vector<8x1xf32>
    %103 = math.exp %102 : vector<8x1xf32>
    %cst_47 = arith.constant 1.000000e+00 : f32
    %104 = vector.broadcast %cst_47 : f32 to vector<8x1xf32>
    %105 = arith.addf %104, %103 : vector<8x1xf32>
    %106 = math.log %105 : vector<8x1xf32>
    %107 = arith.subf %99, %106 : vector<8x1xf32>
    %108 = arith.addf %90, %107 : vector<8x1xf32>
    %c6 = arith.constant 6 : index
    %c0_48 = arith.constant 0 : index
    %c0_49 = arith.constant 0 : index
    %109 = vector.load %arg5[%c6, %c0_48, %c0_49] : memref<9x8x128xf32, #tpu.memory_space<vmem>>, vector<1x8x128xf32>
    %110 = vector.shape_cast %109 : vector<1x8x128xf32> to vector<8x128xf32>
    %111 = arith.mulf %110, %3 : vector<8x128xf32>
    %cst_50 = arith.constant dense<0.000000e+00> : vector<8xf32>
    %112 = vector.multi_reduction <add>, %111, %cst_50 [1] : vector<8x128xf32> to vector<8xf32>
    %113 = vector.shape_cast %112 : vector<8xf32> to vector<8x1xf32>
    %cst_51 = arith.constant 0.000000e+00 : f32
    %114 = vector.broadcast %cst_51 : f32 to vector<8x1xf32>
    %115 = arith.subf %114, %113 : vector<8x1xf32>
    %cst_52 = arith.constant 0.000000e+00 : f32
    %116 = vector.broadcast %cst_52 : f32 to vector<8x1xf32>
    %117 = arith.minimumf %115, %116 : vector<8x1xf32>
    %118 = math.absf %115 : vector<8x1xf32>
    %cst_53 = arith.constant 0.000000e+00 : f32
    %119 = vector.broadcast %cst_53 : f32 to vector<8x1xf32>
    %120 = arith.subf %119, %118 : vector<8x1xf32>
    %121 = math.exp %120 : vector<8x1xf32>
    %cst_54 = arith.constant 1.000000e+00 : f32
    %122 = vector.broadcast %cst_54 : f32 to vector<8x1xf32>
    %123 = arith.addf %122, %121 : vector<8x1xf32>
    %124 = math.log %123 : vector<8x1xf32>
    %125 = arith.subf %117, %124 : vector<8x1xf32>
    %126 = arith.addf %108, %125 : vector<8x1xf32>
    %c7 = arith.constant 7 : index
    %c0_55 = arith.constant 0 : index
    %c0_56 = arith.constant 0 : index
    %127 = vector.load %arg5[%c7, %c0_55, %c0_56] : memref<9x8x128xf32, #tpu.memory_space<vmem>>, vector<1x8x128xf32>
    %128 = vector.shape_cast %127 : vector<1x8x128xf32> to vector<8x128xf32>
    %129 = arith.mulf %128, %3 : vector<8x128xf32>
    %cst_57 = arith.constant dense<0.000000e+00> : vector<8xf32>
    %130 = vector.multi_reduction <add>, %129, %cst_57 [1] : vector<8x128xf32> to vector<8xf32>
    %131 = vector.shape_cast %130 : vector<8xf32> to vector<8x1xf32>
    %cst_58 = arith.constant 0.000000e+00 : f32
    %132 = vector.broadcast %cst_58 : f32 to vector<8x1xf32>
    %133 = arith.subf %132, %131 : vector<8x1xf32>
    %cst_59 = arith.constant 0.000000e+00 : f32
    %134 = vector.broadcast %cst_59 : f32 to vector<8x1xf32>
    %135 = arith.minimumf %133, %134 : vector<8x1xf32>
    %136 = math.absf %133 : vector<8x1xf32>
    %cst_60 = arith.constant 0.000000e+00 : f32
    %137 = vector.broadcast %cst_60 : f32 to vector<8x1xf32>
    %138 = arith.subf %137, %136 : vector<8x1xf32>
    %139 = math.exp %138 : vector<8x1xf32>
    %cst_61 = arith.constant 1.000000e+00 : f32
    %140 = vector.broadcast %cst_61 : f32 to vector<8x1xf32>
    %141 = arith.addf %140, %139 : vector<8x1xf32>
    %142 = math.log %141 : vector<8x1xf32>
    %143 = arith.subf %135, %142 : vector<8x1xf32>
    %144 = arith.addf %126, %143 : vector<8x1xf32>
    %c8 = arith.constant 8 : index
    %c0_62 = arith.constant 0 : index
    %c0_63 = arith.constant 0 : index
    %145 = vector.load %arg5[%c8, %c0_62, %c0_63] : memref<9x8x128xf32, #tpu.memory_space<vmem>>, vector<1x8x128xf32>
    %146 = vector.shape_cast %145 : vector<1x8x128xf32> to vector<8x128xf32>
    %147 = arith.mulf %146, %3 : vector<8x128xf32>
    %cst_64 = arith.constant dense<0.000000e+00> : vector<8xf32>
    %148 = vector.multi_reduction <add>, %147, %cst_64 [1] : vector<8x128xf32> to vector<8xf32>
    %149 = vector.shape_cast %148 : vector<8xf32> to vector<8x1xf32>
    %cst_65 = arith.constant 0.000000e+00 : f32
    %150 = vector.broadcast %cst_65 : f32 to vector<8x1xf32>
    %151 = arith.subf %150, %149 : vector<8x1xf32>
    %cst_66 = arith.constant 0.000000e+00 : f32
    %152 = vector.broadcast %cst_66 : f32 to vector<8x1xf32>
    %153 = arith.minimumf %151, %152 : vector<8x1xf32>
    %154 = math.absf %151 : vector<8x1xf32>
    %cst_67 = arith.constant 0.000000e+00 : f32
    %155 = vector.broadcast %cst_67 : f32 to vector<8x1xf32>
    %156 = arith.subf %155, %154 : vector<8x1xf32>
    %157 = math.exp %156 : vector<8x1xf32>
    %cst_68 = arith.constant 1.000000e+00 : f32
    %158 = vector.broadcast %cst_68 : f32 to vector<8x1xf32>
    %159 = arith.addf %158, %157 : vector<8x1xf32>
    %160 = math.log %159 : vector<8x1xf32>
    %161 = arith.subf %153, %160 : vector<8x1xf32>
    %162 = arith.addf %144, %161 : vector<8x1xf32>
    %163 = tpu.iota {dimensions = array<i32: 0>} : vector<8x1xi32>
    %164 = vector.broadcast %0 : i32 to vector<8x1xi32>
    %165 = arith.addi %163, %164 : vector<8x1xi32>
    %c8_i32_69 = arith.constant 8 : i32
    %166 = vector.broadcast %c8_i32_69 : i32 to vector<8x1xi32>
    %167 = arith.cmpi slt, %165, %166 : vector<8x1xi32>
    %168 = arith.extui %167 : vector<8x1xi1> to vector<8x1xi32>
    %169 = arith.sitofp %168 : vector<8x1xi32> to vector<8x1xf32>
    %170 = arith.mulf %162, %169 : vector<8x1xf32>
    %171 = vector.shape_cast %170 : vector<8x1xf32> to vector<1x8x1xf32>
    %cst_70 = arith.constant dense<0.000000e+00> : vector<1xf32>
    %172 = vector.multi_reduction <add>, %171, %cst_70 [1, 2] : vector<1x8x1xf32> to vector<1xf32>
    %173 = vector.shape_cast %172 : vector<1xf32> to vector<1x1x1xf32>
    %174 = vector.extract %173[0, 0, 0] : f32 from vector<1x1x1xf32>
    %175 = vector.broadcast %174 : f32 to vector<1x8x128xf32>
    %c0_71 = arith.constant 0 : index
    %c0_72 = arith.constant 0 : index
    %c0_73 = arith.constant 0 : index
    %176 = vector.load %arg4[%c0_71, %c0_72, %c0_73] : memref<1x8x128xf32, #tpu.memory_space<vmem>>, vector<1x8x128xf32>
    tpu.vector_store %arg4[%c0_71, %c0_72, %c0_73], %175 {strides = array<i32>} : memref<1x8x128xf32, #tpu.memory_space<vmem>>, vector<1x8x128xf32>,
    return
  }
  func.func @transform_0(%arg0: i32, %arg1: memref<72xi32, #tpu.memory_space<smem>>) -> (i32, i32) {
    %c0_i32 = arith.constant 0 : i32
    %c0_i32_0 = arith.constant 0 : i32
    return %arg0, %c0_i32 : i32, i32
  }
  func.func @transform_2(%arg0: i32, %arg1: memref<72xi32, #tpu.memory_space<smem>>) -> (i32, i32, i32) {
    %c0_i32 = arith.constant 0 : i32
    %c0_i32_0 = arith.constant 0 : i32
    %c0_i32_1 = arith.constant 0 : i32
    return %arg0, %c0_i32, %c0_i32_0 : i32, i32, i32
  }
}

</mosaic_0001>

<bundles_post_ra>
// kernel: tpu_custom_call.1
= control target key start
LH: loop header
LB: loop body
LE: loop exit
PB: predicated region body
PF: predicated region fallthrough
CT: control target
= control target key end

     0   :  { %s1101_s0 = inlined_call_operand.hbm [shape: s32[72], index: 0, kind: input, shape index: {}]   ;;  %s1102_s1 = inlined_call_operand.hbm [shape: f32[8,128], index: 1, kind: input, shape index: {}]   ;;  %s1103_s2 = inlined_call_operand.hbm [shape: f32[64,128], index: 2, kind: input, shape index: {}]   ;;  %s1104_s3 = inlined_call_operand.hbm [shape: f32[1,8,128], index: 3, kind: output, shape index: {}]  }
   0x1   :  { %s507_s14 = scalar_lea.hbm %s1101_s0, 16 }
   0x2   :  { %p508_p0 = scmp.ne.s32.totalorder %s1101_s0, %s507_s14  ;;  %p511_p1 = scmp.lt.u32.totalorder %s507_s14, %s1101_s0 }
   0x4   :  { %p513_p2 = pnand %p511_p1, %p508_p0 }
   0x6   :  { %516 = shalt.err (!%p513_p2)  }
   0x7   :  { %s801_s19 = smov [#allocation5]  }
   0x8   :  { %9 = dma.hbm_to_smem %s1101_s0, 16, %s801_s19, [#allocation4] }
   0x9   :  { %785 = dma.done.wait [#allocation4], 16 }
   0xa   :  { %786 = vsyncadd [#allocation4], 4294967280 }
   0xb   :  { %11 = sfence }
   0xc   :  { %12 = vsyncpa [#allocation7], 0 }
   0xd   :  { %13 = vsyncpa [#allocation8], 0  ;;  %s802_s22 = smov [#allocation6]   ;;  %s517_s26 = scalar_lea.hbm %s1102_s1, 128 }
   0xe   :  { %s20_s23 = sshll.u32 %s802_s22, 4  ;;  %p518_p3 = scmp.ne.s32.totalorder %s1102_s1, %s517_s26  ;;  %s21_s23 = int_to_ptr.vmem [resolvable:$true] %s20_s23 }
   0xf   :  { %p521_p4 = scmp.lt.u32.totalorder %s517_s26, %s1102_s1 }
  0x11   :  { %p523_p5 = pnand %p521_p4, %p518_p3 }
  0x13   :  { %526 = shalt.err (!%p523_p5)
}
  0x14   :  { %s527_s0 = scalar_lea.vmem %s21_s23, 128  ;;  %p532_p7 = scmp.lt.s32.totalorder %s21_s23, %s21_s23 }
  0x15   :  { %p528_p6 = scmp.ne.s32.totalorder %s21_s23, %s527_s0  ;;  %p533_p8 = scmp.lt.s32.totalorder %s527_s0, %s527_s0 }
  0x17   :  { %p534_p9 = por %p533_p8, %p532_p7 }
  0x19   :  { %p535_p10 = pnand %p534_p9, %p528_p6 }
  0x1b   :  { %538 = shalt.err (!%p535_p10)
}
  0x1c   :  { %23 = dma.hbm_to_vmem [thread:$0]  %s1102_s1, 128, %s21_s23, [#allocation7]  }
  0x1d   :  { %787 = dma.done.wait [#allocation7], 128  }
  0x1e   :  { %788 = vsyncadd [#allocation7], 4294967168  ;;  %s849_s6 = smov 0  }
  0x1f LB: > { %s855_s7 = smul.u32 9, %s795_s6  ;;  %s858_s8 = scalar_lea.vmem [#allocation2], %s795_s6  ;;  %s795_s6 = sphi %s849_s6, %s33_s6  }
  0x20   : > { %s47_s1 = sshll.u32 %s858_s8, 4  ;;  %s401_s9 = scalar_lea.vmem %s858_s8, 8 [#allocation2]  ;;  %s863_s1 = int_to_ptr.vmem [resolvable:$true] %s47_s1 }
  0x21   : > { %s36_s10 = sld [smem:[#allocation5 + %s855_s7]]  ;;  %s51_s11 = sadd.s32 1, %s855_s7 }
  0x22   : > { %s64_s12 = sshll.u32 %s401_s9, 4  ;;  %s866_s13 = sld [smem:[#allocation5 + %s51_s11]]  ;;  %s868_s12 = int_to_ptr.vmem [resolvable:$true] %s64_s12 }
  0x23   : > { %s68_s14 = sadd.s32 2, %s855_s7  ;;  %s405_s15 = scalar_lea.vmem %s858_s8, 16 [#allocation2] }
  0x24   : > { %s872_s16 = sld [smem:[#allocation5 + %s68_s14]]  ;;  %s81_s17 = sshll.u32 %s405_s15, 4  ;;  %s874_s17 = int_to_ptr.vmem [resolvable:$true] %s81_s17 }
  0x25   : > { %s85_s18 = sadd.s32 3, %s855_s7  ;;  %s409_s24 = scalar_lea.vmem %s858_s8, 24 [#allocation2] }
  0x26   : > { %s877_s20 = sld [smem:[#allocation5 + %s85_s18]]  ;;  %s886_s28 = scalar_lea.hbm %s1103_s2, 1024 }
  0x27   : > { %s440_s19 = sshll.u32 %s36_s10, 4 }
  0x28   : > { %s38_s23 = scalar_lea.hbm %s1103_s2, %s440_s19 }
  0x29   : > { %s539_s25 = scalar_lea.hbm %s38_s23, 16  ;;  %p542_p12 = scmp.lt.u32.totalorder %s38_s23, %s1103_s2 }
  0x2a   : > { %p540_p11 = scmp.ne.s32.totalorder %s38_s23, %s539_s25  ;;  %p543_p13 = scmp.lt.u32.totalorder %s886_s28, %s539_s25 }
  0x2b   : > { %p545_p1 = scmp.lt.u32.totalorder %s539_s25, %s38_s23 }
  0x2c   : > { %p544_p0 = por %p543_p13, %p542_p12 }
  0x2e   : > { %p546_p2 = por %p545_p1, %p544_p0 }
  0x30   : > { %p547_p3 = pnand %p546_p2, %p540_p11 }
  0x32   : > { %550 = shalt.err (!%p547_p3)  }
  0x33   : > { %s551_s0 = scalar_lea.vmem %s863_s1, 16  ;;  %s803_s4 = smov [#allocation2]  }
  0x34   : > { %p552_p4 = scmp.ne.s32.totalorder %s863_s1, %s551_s0  ;;  %s553_s5 = sshll.u32 %s803_s4, 4  ;;  %s894_s5 = int_to_ptr.vmem [resolvable:$false] %s553_s5 }
  0x35   : > { %s897_s9 = scalar_lea.vmem %s894_s5, 1152  ;;  %p556_p5 = scmp.lt.s32.totalorder %s863_s1, %s894_s5 }
  0x36   : > { %p557_p6 = scmp.lt.s32.totalorder %s897_s9, %s551_s0 }
  0x38   : > { %p558_p7 = por %p557_p6, %p556_p5 }
  0x3a   : > { %p559_p8 = pnand %p558_p7, %p552_p4 }
  0x3c   : > { %562 = shalt.err (!%p559_p8)  }
  0x3d   : > { %50 = dma.hbm_to_vmem [thread:$0]  %s38_s23, 16, %s863_s1, [#allocation3] }
  0x3e   : > { %s441_s10 = sshll.u32 %s866_s13, 4  ;;  %s904_s11 = sshll.u32 %s409_s24, 4  ;;  %s99_s11 = int_to_ptr.vmem [resolvable:$true] %s904_s11 }
  0x3f   : > { %s54_s18 = scalar_lea.hbm %s1103_s2, %s441_s10  ;;  %s442_s19 = sshll.u32 %s872_s16, 4 }
  0x40   : > { %s563_s21 = scalar_lea.hbm %s54_s18, 16  ;;  %p566_p10 = scmp.lt.u32.totalorder %s54_s18, %s1103_s2 }
  0x41   : > { %p564_p9 = scmp.ne.s32.totalorder %s54_s18, %s563_s21  ;;  %p567_p11 = scmp.lt.u32.totalorder %s886_s28, %s563_s21 }
  0x42   : > { %p569_p13 = scmp.lt.u32.totalorder %s563_s21, %s54_s18 }
  0x43   : > { %p568_p12 = por %p567_p11, %p566_p10 }
  0x45   : > { %p570_p0 = por %p569_p13, %p568_p12 }
  0x47   : > { %p571_p1 = pnand %p570_p0, %p564_p9 }
  0x49   : > { %574 = shalt.err (!%p571_p1)  }
  0x4a   : > { %s575_s1 = scalar_lea.vmem %s868_s12, 16  ;;  %p580_p3 = scmp.lt.s32.totalorder %s868_s12, %s894_s5 }
  0x4b   : > { %p576_p2 = scmp.ne.s32.totalorder %s868_s12, %s575_s1  ;;  %p581_p4 = scmp.lt.s32.totalorder %s897_s9, %s575_s1 }
  0x4d   : > { %p582_p5 = por %p581_p4, %p580_p3 }
  0x4f   : > { %p583_p6 = pnand %p582_p5, %p576_p2 }
  0x51   : > { %586 = shalt.err (!%p583_p6)  }
  0x52   : > { %67 = dma.hbm_to_vmem [thread:$0]  %s54_s18, 16, %s868_s12, [#allocation3] }
  0x53   : > { %s71_s23 = scalar_lea.hbm %s1103_s2, %s442_s19  ;;  %s443_s24 = sshll.u32 %s877_s20, 4 }
  0x54   : > { %s587_s26 = scalar_lea.hbm %s71_s23, 16  ;;  %p590_p8 = scmp.lt.u32.totalorder %s71_s23, %s1103_s2 }
  0x55   : > { %p588_p7 = scmp.ne.s32.totalorder %s71_s23, %s587_s26  ;;  %p591_p9 = scmp.lt.u32.totalorder %s886_s28, %s587_s26 }
  0x56   : > { %p593_p11 = scmp.lt.u32.totalorder %s587_s26, %s71_s23 }
  0x57   : > { %p592_p10 = por %p591_p9, %p590_p8 }
  0x59   : > { %p594_p12 = por %p593_p11, %p592_p10 }
  0x5b   : > { %p595_p13 = pnand %p594_p12, %p588_p7 }
  0x5d   : > { %598 = shalt.err (!%p595_p13)  }
  0x5e   : > { %s599_s12 = scalar_lea.vmem %s874_s17, 16  ;;  %p604_p1 = scmp.lt.s32.totalorder %s874_s17, %s894_s5 }
  0x5f   : > { %p600_p0 = scmp.ne.s32.totalorder %s874_s17, %s599_s12  ;;  %p605_p2 = scmp.lt.s32.totalorder %s897_s9, %s599_s12 }
  0x61   : > { %p606_p3 = por %p605_p2, %p604_p1 }
  0x63   : > { %p607_p4 = pnand %p606_p3, %p600_p0 }
  0x65   : > { %610 = shalt.err (!%p607_p4)  }
  0x66   : > { %84 = dma.hbm_to_vmem [thread:$0]  %s71_s23, 16, %s874_s17, [#allocation3] }
  0x67   : > { %s88_s0 = scalar_lea.hbm %s1103_s2, %s443_s24 }
  0x68   : > { %s611_s4 = scalar_lea.hbm %s88_s0, 16  ;;  %p614_p6 = scmp.lt.u32.totalorder %s88_s0, %s1103_s2 }
  0x69   : > { %p612_p5 = scmp.ne.s32.totalorder %s88_s0, %s611_s4  ;;  %p615_p7 = scmp.lt.u32.totalorder %s886_s28, %s611_s4 }
  0x6a   : > { %p617_p9 = scmp.lt.u32.totalorder %s611_s4, %s88_s0 }
  0x6b   : > { %p616_p8 = por %p615_p7, %p614_p6 }
  0x6d   : > { %p618_p10 = por %p617_p9, %p616_p8 }
  0x6f   : > { %p619_p11 = pnand %p618_p10, %p612_p5 }
  0x71   : > { %622 = shalt.err (!%p619_p11)  }
  0x72   : > { %s623_s15 = scalar_lea.vmem %s99_s11, 16  ;;  %p628_p13 = scmp.lt.s32.totalorder %s99_s11, %s894_s5 }
  0x73   : > { %p624_p12 = scmp.ne.s32.totalorder %s99_s11, %s623_s15  ;;  %p629_p0 = scmp.lt.s32.totalorder %s897_s9, %s623_s15 }
  0x75   : > { %p630_p1 = por %p629_p0, %p628_p13 }
  0x77   : > { %p631_p2 = pnand %p630_p1, %p624_p12 }
  0x79   : > { %634 = shalt.err (!%p631_p2)  }
  0x7a   : > { %101 = dma.hbm_to_vmem [thread:$0]  %s88_s0, 16, %s99_s11, [#allocation3] }
  0x7b   : > { %s102_s17 = sadd.s32 4, %s855_s7  ;;  %s413_s18 = scalar_lea.vmem %s858_s8, 32 [#allocation2] }
  0x7c   : > { %s103_s19 = sld [smem:[#allocation5 + %s102_s17]]  ;;  %s115_s21 = sshll.u32 %s413_s18, 4  ;;  %s946_s21 = int_to_ptr.vmem [resolvable:$true] %s115_s21 }
  0x7d   : > { %s119_s22 = sadd.s32 5, %s855_s7  ;;  %s417_s1 = scalar_lea.vmem %s858_s8, 40 [#allocation2] }
  0x7e   : > { %s949_s25 = sld [smem:[#allocation5 + %s119_s22]]  ;;  %s132_s13 = sshll.u32 %s417_s1, 4  ;;  %s953_s13 = int_to_ptr.vmem [resolvable:$true] %s132_s13 }
  0x7f   : > { %s136_s11 = sadd.s32 6, %s855_s7  ;;  %s421_s23 = scalar_lea.vmem %s858_s8, 48 [#allocation2] }
  0x80   : > { %s955_s16 = sld [smem:[#allocation5 + %s136_s11]]  ;;  %s153_s24 = sadd.s32 7, %s855_s7 }
  0x81   : > { %s149_s27 = sshll.u32 %s421_s23, 4  ;;  %s962_s27 = int_to_ptr.vmem [resolvable:$true] %s149_s27 }
  0x82   : > { %s444_s26 = sshll.u32 %s103_s19, 4 }
  0x83   : > { %s105_s20 = scalar_lea.hbm %s1103_s2, %s444_s26 }
  0x84   : > { %s635_s30 = scalar_lea.hbm %s105_s20, 16  ;;  %p638_p4 = scmp.lt.u32.totalorder %s105_s20, %s1103_s2 }
  0x85   : > { %p636_p3 = scmp.ne.s32.totalorder %s105_s20, %s635_s30  ;;  %p639_p5 = scmp.lt.u32.totalorder %s886_s28, %s635_s30 }
  0x86   : > { %p641_p7 = scmp.lt.u32.totalorder %s635_s30, %s105_s20 }
  0x87   : > { %p640_p6 = por %p639_p5, %p638_p4 }
  0x89   : > { %p642_p8 = por %p641_p7, %p640_p6 }
  0x8b   : > { %p643_p9 = pnand %p642_p8, %p636_p3 }
  0x8d   : > { %646 = shalt.err (!%p643_p9)  }
  0x8e   : > { %s647_s10 = scalar_lea.vmem %s946_s21, 16  ;;  %p652_p11 = scmp.lt.s32.totalorder %s946_s21, %s894_s5 }
  0x8f   : > { %p648_p10 = scmp.ne.s32.totalorder %s946_s21, %s647_s10  ;;  %p653_p12 = scmp.lt.s32.totalorder %s897_s9, %s647_s10 }
  0x91   : > { %p654_p13 = por %p653_p12, %p652_p11 }
  0x93   : > { %p655_p0 = pnand %p654_p13, %p648_p10 }
  0x95   : > { %658 = shalt.err (!%p655_p0)  }
  0x96   : > { %118 = dma.hbm_to_vmem [thread:$0]  %s105_s20, 16, %s946_s21, [#allocation3] }
  0x97   : > { %s445_s14 = sshll.u32 %s949_s25, 4  ;;  %s975_s15 = sld [smem:[#allocation5 + %s153_s24]] }
  0x98   : > { %s122_s19 = scalar_lea.hbm %s1103_s2, %s445_s14  ;;  %s446_s22 = sshll.u32 %s955_s16, 4 }
  0x99   : > { %s659_s1 = scalar_lea.hbm %s122_s19, 16  ;;  %p662_p2 = scmp.lt.u32.totalorder %s122_s19, %s1103_s2 }
  0x9a   : > { %p660_p1 = scmp.ne.s32.totalorder %s122_s19, %s659_s1  ;;  %p663_p3 = scmp.lt.u32.totalorder %s886_s28, %s659_s1 }
  0x9b   : > { %p665_p5 = scmp.lt.u32.totalorder %s659_s1, %s122_s19 }
  0x9c   : > { %p664_p4 = por %p663_p3, %p662_p2 }
  0x9e   : > { %p666_p6 = por %p665_p5, %p664_p4 }
  0xa0   : > { %p667_p7 = pnand %p666_p6, %p660_p1 }
  0xa2   : > { %670 = shalt.err (!%p667_p7)  }
  0xa3   : > { %s671_s21 = scalar_lea.vmem %s953_s13, 16  ;;  %p676_p9 = scmp.lt.s32.totalorder %s953_s13, %s894_s5 }
  0xa4   : > { %p672_p8 = scmp.ne.s32.totalorder %s953_s13, %s671_s21  ;;  %p677_p10 = scmp.lt.s32.totalorder %s897_s9, %s671_s21 }
  0xa6   : > { %p678_p11 = por %p677_p10, %p676_p9 }
  0xa8   : > { %p679_p12 = pnand %p678_p11, %p672_p8 }
  0xaa   : > { %682 = shalt.err (!%p679_p12)  }
  0xab   : > { %135 = dma.hbm_to_vmem [thread:$0]  %s122_s19, 16, %s953_s13, [#allocation3] }
  0xac   : > { %s139_s24 = scalar_lea.hbm %s1103_s2, %s446_s22  ;;  %s425_s26 = scalar_lea.vmem %s858_s8, 56 [#allocation2] }
  0xad   : > { %s683_s29 = scalar_lea.hbm %s139_s24, 16  ;;  %p686_p0 = scmp.lt.u32.totalorder %s139_s24, %s1103_s2 }
  0xae   : > { %p684_p13 = scmp.ne.s32.totalorder %s139_s24, %s683_s29  ;;  %p687_p1 = scmp.lt.u32.totalorder %s886_s28, %s683_s29 }
  0xaf   : > { %p689_p3 = scmp.lt.u32.totalorder %s683_s29, %s139_s24 }
  0xb0   : > { %p688_p2 = por %p687_p1, %p686_p0 }
  0xb2   : > { %p690_p4 = por %p689_p3, %p688_p2 }
  0xb4   : > { %p691_p5 = pnand %p690_p4, %p684_p13 }
  0xb6   : > { %694 = shalt.err (!%p691_p5)  }
  0xb7   : > { %s695_s13 = scalar_lea.vmem %s962_s27, 16  ;;  %p700_p7 = scmp.lt.s32.totalorder %s962_s27, %s894_s5 }
  0xb8   : > { %p696_p6 = scmp.ne.s32.totalorder %s962_s27, %s695_s13  ;;  %p701_p8 = scmp.lt.s32.totalorder %s897_s9, %s695_s13 }
  0xba   : > { %p702_p9 = por %p701_p8, %p700_p7 }
  0xbc   : > { %p703_p10 = pnand %p702_p9, %p696_p6 }
  0xbe   : > { %706 = shalt.err (!%p703_p10)  }
  0xbf   : > { %152 = dma.hbm_to_vmem [thread:$0]  %s139_s24, 16, %s962_s27, [#allocation3] }
  0xc0   : > { %s166_s30 = sshll.u32 %s425_s26, 4  ;;  %s170_s0 = sadd.s32 8, %s855_s7  ;;  %s167_s30 = int_to_ptr.vmem [resolvable:$true] %s166_s30 }
  0xc1   : > { %s447_s4 = sshll.u32 %s975_s15, 4  ;;  %s171_s18 = sld [smem:[#allocation5 + %s170_s0]] }
  0xc2   : > { %s156_s17 = scalar_lea.hbm %s1103_s2, %s447_s4 }
  0xc3   : > { %s707_s19 = scalar_lea.hbm %s156_s17, 16  ;;  %p710_p12 = scmp.lt.u32.totalorder %s156_s17, %s1103_s2 }
  0xc4   : > { %p708_p11 = scmp.ne.s32.totalorder %s156_s17, %s707_s19  ;;  %p711_p13 = scmp.lt.u32.totalorder %s886_s28, %s707_s19 }
  0xc5   : > { %p713_p1 = scmp.lt.u32.totalorder %s707_s19, %s156_s17 }
  0xc6   : > { %p712_p0 = por %p711_p13, %p710_p12 }
  0xc8   : > { %p714_p2 = por %p713_p1, %p712_p0 }
  0xca   : > { %p715_p3 = pnand %p714_p2, %p708_p11 }
  0xcc   : > { %718 = shalt.err (!%p715_p3)  }
  0xcd   : > { %s719_s7 = scalar_lea.vmem %s167_s30, 16  ;;  %p724_p5 = scmp.lt.s32.totalorder %s167_s30, %s894_s5 }
  0xce   : > { %p720_p4 = scmp.ne.s32.totalorder %s167_s30, %s719_s7  ;;  %p725_p6 = scmp.lt.s32.totalorder %s897_s9, %s719_s7 }
  0xd0   : > { %p726_p7 = por %p725_p6, %p724_p5 }
  0xd2   : > { %p727_p8 = pnand %p726_p7, %p720_p4 }
  0xd4   : > { %730 = shalt.err (!%p727_p8)  }
  0xd5   : > { %169 = dma.hbm_to_vmem [thread:$0]  %s156_s17, 16, %s167_s30, [#allocation3] }
  0xd6   : > { %s429_s27 = scalar_lea.vmem %s858_s8, 64 [#allocation2]  ;;  %s448_s11 = sshll.u32 %s171_s18, 4 }
  0xd7   : > { %s183_s15 = sshll.u32 %s429_s27, 4  ;;  %s173_s25 = scalar_lea.hbm %s1103_s2, %s448_s11  ;;  %s184_s15 = int_to_ptr.vmem [resolvable:$true] %s183_s15 }
  0xd8   : > { %s731_s16 = scalar_lea.hbm %s173_s25, 16  ;;  %p734_p10 = scmp.lt.u32.totalorder %s173_s25, %s1103_s2 }
  0xd9   : > { %p732_p9 = scmp.ne.s32.totalorder %s173_s25, %s731_s16  ;;  %p735_p11 = scmp.lt.u32.totalorder %s886_s28, %s731_s16 }
  0xda   : > { %p737_p13 = scmp.lt.u32.totalorder %s731_s16, %s173_s25 }
  0xdb   : > { %p736_p12 = por %p735_p11, %p734_p10 }
  0xdd   : > { %p738_p0 = por %p737_p13, %p736_p12 }
  0xdf   : > { %p739_p1 = pnand %p738_p0, %p732_p9 }
  0xe1   : > { %742 = shalt.err (!%p739_p1)  }
  0xe2   : > { %s743_s8 = scalar_lea.vmem %s184_s15, 16  ;;  %p748_p3 = scmp.lt.s32.totalorder %s184_s15, %s894_s5 }
  0xe3   : > { %p744_p2 = scmp.ne.s32.totalorder %s184_s15, %s743_s8  ;;  %p749_p4 = scmp.lt.s32.totalorder %s897_s9, %s743_s8 }
  0xe5   : > { %p750_p5 = por %p749_p4, %p748_p3 }
  0xe7   : > { %p751_p6 = pnand %p750_p5, %p744_p2 }
  0xe9   : > { %754 = shalt.err (!%p751_p6)  }
  0xea   : > { %186 = dma.hbm_to_vmem [thread:$0]  %s173_s25, 16, %s184_s15, [#allocation3] }
  0xeb   : > { %s33_s6 = sadd.s32 1, %s795_s6  }
  0xec   : > { %p30_p7 = scmp.ge.s32.totalorder %s33_s6, 8  }
  0xed   :  { %s797_s28 = smov (%p30_p7), 0  }
  0xee   :  { %32 = sbr.rel (!%p30_p7) target bundleno = 31 (0x1f), region = 104 }
  0xf5 LB: > { %789 = dma.done.wait [#allocation3], 144  ;;  %s799_s28 = sphi %s797_s28, %s192_s28  }
  0xf6   : > { %790 = vsyncadd [#allocation3], 4294967152  ;;  %s192_s28 = sadd.s32 1, %s799_s28  }
  0xf7   : > { %p189_p8 = scmp.ge.s32.totalorder %s192_s28, 8  }
  0xf8   :  { %v211_v0 = vld [vmem:[#allocation6] sm:$0xff] (%p189_p8)  ;;  %v242_v1 = vld [vmem:[#allocation2 + $0x10] sm:$0xff] (%p189_p8)  ;;  %v258_v5 = vld [vmem:[#allocation2 + $0x18] sm:$0xff] (%p189_p8)  ;;  %vm361_vm0 = vcmask (%p189_p8), 7168   ;;  %s804_s2 = smov (%p189_p8), [#allocation9]  }
  0xf9   :  { %191 = sbr.rel (!%p189_p8) target bundleno = 245 (0xf5), region = 115  ;;  %v226_v2 = vld [vmem:[#allocation2 + $0x8] sm:$0xff] (%p189_p8)  ;;  %v243_v3 = vmul.f32 (%p189_p8), %v242_v1, %v211_v0  ;;  %v212_v6 = vld [vmem:[#allocation2] sm:$0xff] (%p189_p8)  ;;  %v259_v7 = vmul.f32 (%p189_p8), %v258_v5, %v211_v0  ;;  %v322_v13 = vld [vmem:[#allocation2 + $0x38] sm:$0xff] (%p189_p8)  ;;  %s380_s6 = sshll.u32 (%p189_p8), %s804_s2, 4  ;;  %s381_s6 = int_to_ptr.vmem [resolvable:$true] %s380_s6 }
  0xfa   :  { %v227_v4 = vmul.f32 (%p189_p8), %v226_v2, %v211_v0  ;;  %v213_v8 = vmul.f32 (%p189_p8), %v212_v6, %v211_v0  ;;  %v290_v9 = vld [vmem:[#allocation2 + $0x28] sm:$0xff] (%p189_p8)  ;;  %v274_v10 = vld [vmem:[#allocation2 + $0x20] sm:$0xff] (%p189_p8)  ;;  %v306_v14 = vld [vmem:[#allocation2 + $0x30] sm:$0xff] (%p189_p8)  ;;  %v323_v15 = vmul.f32 (%p189_p8), %v322_v13, %v211_v0  ;;  %s755_s9 = scalar_lea.vmem (%p189_p8), %s381_s6, 128  ;;  %p760_p10 = scmp.lt.s32.totalorder (%p189_p8), %s381_s6, %s381_s6 }
  0xfb   :  { %244 = vadd.xlane.f32.xlu1 (%p189_p8), %v243_v3  ;;  %v291_v11 = vmul.f32 (%p189_p8), %v290_v9, %v211_v0  ;;  %v275_v12 = vmul.f32 (%p189_p8), %v274_v10, %v211_v0  ;;  %v307_v16 = vmul.f32 (%p189_p8), %v306_v14, %v211_v0  ;;  %v338_v17 = vld [vmem:[#allocation2 + $0x40] sm:$0xff] (%p189_p8)  ;;  %p756_p9 = scmp.ne.s32.totalorder (%p189_p8), %s381_s6, %s755_s9  ;;  %p761_p11 = scmp.lt.s32.totalorder (%p189_p8), %s755_s9, %s755_s9 }
  0xfc   :  { %228 = vadd.xlane.f32.xlu0 (%p189_p8), %v227_v4  ;;  %v339_v18 = vmul.f32 (%p189_p8), %v338_v17, %v211_v0 }
  0xfd   :  { %p762_p12 = por (%p189_p8), %p761_p11, %p760_p10 }
  0xff   :  { %260 = vadd.xlane.f32.xlu1 (%p189_p8), %v259_v7  ;;  %p763_p13 = pnand (%p189_p8), %p762_p12, %p756_p9 }
 0x100   :  { %214 = vadd.xlane.f32.xlu0 %v213_v8 }
 0x103   :  { %292 = vadd.xlane.f32.xlu1 %v291_v11 }
 0x104   :  { %276 = vadd.xlane.f32.xlu0 %v275_v12 }
 0x107   :  { %324 = vadd.xlane.f32.xlu1 %v323_v15 }
 0x108   :  { %308 = vadd.xlane.f32.xlu0 %v307_v16 }
 0x10c   :  { %340 = vadd.xlane.f32.xlu0 %v339_v18 }
 0x188   :  { %v1029_v19 = vpop.xlane.xlu1 %244 }
 0x189   :  { %v1031_v20 = vpop.xlane.xlu0 %228  ;;  %v246_v21 = vsub.f32 0.0, %v1029_v19 }
 0x18a   :  { %v230_v22 = vsub.f32 0.0, %v1031_v20 }
 0x18b   :  { %v248_v23 = vand.u32 2147483647, %v246_v21 }
 0x18c   :  { %v232_v24 = vand.u32 2147483647, %v230_v22  ;;  %v1039_v25 = vpop.xlane.xlu1 %260 }
 0x18d   :  { %v1041_v26 = vpop.xlane.xlu0 %214  ;;  %v249_v27 = vsub.f32 0.0, %v248_v23  ;;  %v262_v29 = vsub.f32 0.0, %v1039_v25  ;;  %v231_v23 = vmin.f32 %v230_v22, 0.0 }
 0x18e   :  { %v233_v28 = vsub.f32 0.0, %v232_v24  ;;  %v217_v30 = vand.u32 2147483647, %v1041_v26  ;;  %v216_v24 = vmin.f32 %v1041_v26, 0.0 }
 0x18f   :  { %v250_v31 = vmul.f32 1.442695, %v249_v27  ;;  %v264_v33 = vand.u32 2147483647, %v262_v29  ;;  %v263_v20 = vmin.f32 %v262_v29, 0.0 }
 0x190   :  { %v234_v32 = vmul.f32 1.442695, %v233_v28  ;;  %v218_v34 = vsub.f32 0.0, %v217_v30  ;;  %v1047_v35 = vpop.xlane.xlu1 %292 }
 0x191   :  { %v1049_v36 = vpop.xlane.xlu0 %276  ;;  %471 = vpow2.f32 %v250_v31  ;;  %v294_v37 = vsub.f32 0.0, %v1047_v35  ;;  %v265_v39 = vsub.f32 0.0, %v264_v33 }
 0x192   :  { %v278_v38 = vsub.f32 0.0, %v1049_v36  ;;  %473 = vpow2.f32 %v234_v32  ;;  %v219_v40 = vmul.f32 1.442695, %v218_v34  ;;  %v247_v32 = vmin.f32 %v246_v21, 0.0 }
 0x193   :  { %v296_v41 = vand.u32 2147483647, %v294_v37  ;;  %v266_v43 = vmul.f32 1.442695, %v265_v39 }
 0x194   :  { %v280_v42 = vand.u32 2147483647, %v278_v38  ;;  %475 = vpow2.f32 %v219_v40  ;;  %v1057_v44 = vpop.xlane.xlu1 %324 }
 0x195   :  { %v1059_v45 = vpop.xlane.xlu0 %308  ;;  %v297_v46 = vsub.f32 0.0, %v296_v41  ;;  %v326_v48 = vsub.f32 0.0, %v1057_v44  ;;  %477 = vpow2.f32 %v266_v43 }
 0x196   :  { %v281_v47 = vsub.f32 0.0, %v280_v42  ;;  %v310_v49 = vsub.f32 0.0, %v1059_v45 }
 0x197   :  { %v298_v50 = vmul.f32 1.442695, %v297_v46  ;;  %v328_v52 = vand.u32 2147483647, %v326_v48  ;;  %v327_v36 = vmin.f32 %v326_v48, 0.0 }
 0x198   :  { %v282_v51 = vmul.f32 1.442695, %v281_v47  ;;  %v312_v53 = vand.u32 2147483647, %v310_v49  ;;  %v279_v47 = vmin.f32 %v278_v38, 0.0 }
 0x199   :  { %v1067_v54 = vpop.xlane.xlu0 %340  ;;  %479 = vpow2.f32 %v298_v50  ;;  %v329_v56 = vsub.f32 0.0, %v328_v52  ;;  %v295_v52 = vmin.f32 %v294_v37, 0.0 }
 0x19a   :  { %v342_v55 = vsub.f32 0.0, %v1067_v54  ;;  %481 = vpow2.f32 %v282_v51  ;;  %v313_v57 = vsub.f32 0.0, %v312_v53 }
 0x19b   :  { %v472_v58 = vpop.eup %471  ;;  %v330_v62 = vmul.f32 1.442695, %v329_v56 }
 0x19c   :  { %v344_v59 = vand.u32 2147483647, %v342_v55  ;;  %v474_v60 = vpop.eup %473  ;;  %v252_v61 = vadd.f32 1.0, %v472_v58  ;;  %v314_v2 = vmul.f32 1.442695, %v313_v57  ;;  %v311_v58 = vmin.f32 %v310_v49, 0.0 }
 0x19d   :  { %v236_v63 = vadd.f32 1.0, %v474_v60 }
 0x19e   :  { %v345_v0 = vsub.f32 0.0, %v344_v59  ;;  %v476_v1 = vpop.eup %475  ;;  %483 = vlog2.f32 %v252_v61 }
 0x19f   :  { %485 = vlog2.f32 %v236_v63  ;;  %v221_v3 = vadd.f32 1.0, %v476_v1  ;;  %v478_v4 = vpop.eup %477 }
 0x1a0   :  { %487 = vpow2.f32 %v330_v62  ;;  %v346_v5 = vmul.f32 1.442695, %v345_v0  ;;  %v268_v6 = vadd.f32 1.0, %v478_v4  ;;  %v343_v62 = vmin.f32 %v342_v55, 0.0 }
 0x1a1   :  { %489 = vlog2.f32 %v221_v3 }
 0x1a2   :  { %491 = vpow2.f32 %v314_v2 }
 0x1a3   :  { %v480_v7 = vpop.eup %479  ;;  %493 = vlog2.f32 %v268_v6 }
 0x1a4   :  { %v482_v8 = vpop.eup %481  ;;  %v300_v9 = vadd.f32 1.0, %v480_v7  ;;  %495 = vpow2.f32 %v346_v5 }
 0x1a5   :  { %v284_v10 = vadd.f32 1.0, %v482_v8 }
 0x1a6   :  { %497 = vlog2.f32 %v300_v9 }
 0x1a7   :  { %499 = vlog2.f32 %v284_v10 }
 0x1a8   :  { %v484_v11 = vpop.eup %483 }
 0x1a9   :  { %v486_v12 = vpop.eup %485  ;;  %v254_v18 = vmul.f32 0.6931472, %v484_v11 }
 0x1aa   :  { %v488_v13 = vpop.eup %487  ;;  %v238_v14 = vmul.f32 0.6931472, %v486_v12 }
 0x1ab   :  { %v490_v15 = vpop.eup %489  ;;  %v332_v16 = vadd.f32 1.0, %v488_v13  ;;  %v255_v42 = vsub.f32 %v247_v32, %v254_v18 }
 0x1ac   :  { %v492_v17 = vpop.eup %491  ;;  %v223_v27 = vmul.f32 0.6931472, %v490_v15  ;;  %v239_v33 = vsub.f32 %v231_v23, %v238_v14 }
 0x1ad   :  { %v494_v28 = vpop.eup %493  ;;  %501 = vlog2.f32 %v332_v16  ;;  %v316_v30 = vadd.f32 1.0, %v492_v17 }
 0x1ae   :  { %v496_v31 = vpop.eup %495  ;;  %v270_v34 = vmul.f32 0.6931472, %v494_v28  ;;  %v224_v39 = vsub.f32 %v216_v24, %v223_v27 }
 0x1af   :  { %503 = vlog2.f32 %v316_v30  ;;  %v348_v40 = vadd.f32 1.0, %v496_v31 }
 0x1b0   :  { %v498_v41 = vpop.eup %497  ;;  %v240_v22 = vadd.f32 %v239_v33, %v224_v39  ;;  %v271_v43 = vsub.f32 %v263_v20, %v270_v34 }
 0x1b1   :  { %v500_v26 = vpop.eup %499  ;;  %505 = vlog2.f32 %v348_v40  ;;  %v302_v21 = vmul.f32 0.6931472, %v498_v41 }
 0x1b2   :  { %v256_v46 = vadd.f32 %v255_v42, %v240_v22  ;;  %v286_v19 = vmul.f32 0.6931472, %v500_v26 }
 0x1b3   :  { %v303_v57 = vsub.f32 %v295_v52, %v302_v21 }
 0x1b4   :  { %v272_v50 = vadd.f32 %v271_v43, %v256_v46  ;;  %v287_v51 = vsub.f32 %v279_v47, %v286_v19 }
 0x1b6   :  { %v288_v53 = vadd.f32 %v287_v51, %v272_v50 }
 0x1b7   :  { %v502_v56 = vpop.eup %501 }
 0x1b8   :  { %v334_v29 = vmul.f32 0.6931472, %v502_v56  ;;  %v304_v60 = vadd.f32 %v303_v57, %v288_v53 }
 0x1b9   :  { %v504_v25 = vpop.eup %503 }
 0x1ba   :  { %v318_v59 = vmul.f32 0.6931472, %v504_v25  ;;  %v335_v37 = vsub.f32 %v327_v36, %v334_v29 }
 0x1bb   :  { %v506_v61 = vpop.eup %505 }
 0x1bc   :  { %v319_v38 = vsub.f32 %v311_v58, %v318_v59  ;;  %v350_v35 = vmul.f32 0.6931472, %v506_v61 }
 0x1be   :  { %v351_v63 = vsub.f32 %v343_v62, %v350_v35  ;;  %v320_v0 = vadd.f32 %v319_v38, %v304_v60 }
 0x1c0   :  { %v336_v1 = vadd.f32 %v335_v37, %v320_v0 }
 0x1c2   :  { %v352_v2 = vadd.f32 %v351_v63, %v336_v1 }
 0x1c4   :  { %v362_v3 = vsel %vm361_vm0, %v352_v2, 0.0 }
 0x1c5   :  { %363 = vadd.xlane.f32.xlu1 %v362_v3 }
 0x252   :  { %v364_v45 = vpop.xlane.xlu1 %363 }
 0x253   :  { %v365_v49 = vrot.slane %v364_v45, 4 }
 0x255   :  { %v366_v4 = vadd.f32 %v365_v49, %v364_v45 }
 0x257   :  { %v367_v5 = vrot.slane %v366_v4, 2 }
 0x259   :  { %v368_v6 = vadd.f32 %v367_v5, %v366_v4 }
 0x25b   :  { %v369_v44 = vrot.slane %v368_v6, 1 }
 0x25d   :  { %v370_v48 = vadd.f32 %v369_v44, %v368_v6 }
 0x25f   :  { %450 = vpush %v370_v48 }
 0x290   :  { %s451_s5 = spop %450 }
 0x291   :  { %v372_v54 = vstv %s451_s5 }
 0x292   :  { %373 = vst [vmem:[#allocation9] sm:$0xff] %v372_v54 }
 0x293   :  { %766 = shalt.err (!%p763_p13)
}
 0x294   :  { %s767_s20 = scalar_lea.hbm %s1104_s3, 128 }
 0x295   :  { %p768_p0 = scmp.ne.s32.totalorder %s1104_s3, %s767_s20  ;;  %p771_p1 = scmp.lt.u32.totalorder %s767_s20, %s1104_s3 }
 0x297   :  { %p773_p2 = pnand %p771_p1, %p768_p0 }
 0x299   :  { %776 = shalt.err (!%p773_p2)
}
 0x29a   :  { %383 = dma.vmem_to_hbm [thread:$0]  %s381_s6, 128, %s1104_s3, [#allocation8]  }
 0x29b   :  { %791 = dma.done.wait [#allocation8], 128  }
 0x29c   :  { %792 = vsyncadd [#allocation8], 4294967168 }
 0x29d   :  { %387 = vsyncpa [#allocation7], 1 }
 0x29e   :  { %388 = vsyncpa [#allocation8], 1 }
 0x29f   :  { %389 = vsyncmov [#allocation3] }
 0x2a2   :  { %s390_s17 = vpop.sfrf %389 }
 0x2a3   :  { %p449_p3 = scmp.ne.s32.totalorder %s390_s17, 0 }
 0x2a5   :  { %394 = shalt.err (%p449_p3)  }

</bundles_post_ra>
